<compile_context>
chip_gen: v7x
topology: tpu7x:2x2x1
jax: 0.10.0
libtpu: 0.0.40
codegen_flags: <defaults>
</compile_context>

<pallas_src>
import math
import jax
import jax.numpy as jnp
from jax.experimental import pallas as pl
from jax.experimental.pallas import tpu as pltpu

# ---- small synthetic BERT config -------------------------------------------
VOCAB = 128
TYPE_VOCAB = 2
MAX_POS = 16
B, S, H = 2, 8, 32          # batch, seq, hidden
NH = 2                      # attention heads
HD = H // NH                # head dim
FF = 64                     # intermediate (FFN) size
N_LAYERS = 2
EPS = 1e-12                 # BERT LayerNorm eps

# ---- lane-dense (padded) kernel layout --------------------------------------
LANE = 128
HP = LANE                   # padded hidden width
HDP = LANE                  # padded per-head width
FFP = LANE                  # padded FFN width
CTXP = NH * HDP             # concat-of-heads width
QKVP = 3 * CTXP             # fused QKV width (head-major, per-head padded)


# ---- in-kernel helpers ------------------------------------------------------
def _layernorm(x, gamma, beta):
    # single-pass LN over the REAL hidden size; padded lanes (zeros) do not
    # perturb the statistics, and zero-padded gamma/beta keep them at zero.
    inv_h = 1.0 / H
    m1 = jnp.sum(x, axis=-1, keepdims=True) * inv_h
    m2 = jnp.sum(x * x, axis=-1, keepdims=True) * inv_h
    var = m2 - m1 * m1
    return (x - m1) * jax.lax.rsqrt(var + EPS) * gamma + beta


# ---- fused, layer-streamed Pallas kernel ------------------------------------
def bert_layer_kernel(x_ref, bias_ref,
                      emb_g_ref, emb_b_ref,
                      wqkv_ref, bqkv_ref, wo_ref, bo_ref,
                      ln1_g_ref, ln1_b_ref,
                      w1_ref, b1_ref, w2_ref, b2_ref,
                      ln2_g_ref, ln2_b_ref,
                      pool_w_ref, pool_b_ref,
                      seq_ref, pooled_ref,
                      act_ref):
    # grid = (batch, layer); this step handles one sequence x one layer.
    l = pl.program_id(1)

    # layer 0: embedding LayerNorm initializes the resident activation block
    @pl.when(l == 0)
    def _():
        act_ref[...] = _layernorm(x_ref[...], emb_g_ref[...], emb_b_ref[...])

    x = act_ref[...]                                   # (S, HP)
    scale = 1.0 / math.sqrt(HD)

    # fused QKV projection: one (S,HP) x (HP,QKVP) matmul, lane-dense.
    qkv = (jnp.dot(x, wqkv_ref[...], preferred_element_type=jnp.float32)
           + bqkv_ref[...])                            # (S, QKVP)
    bias = bias_ref[...]                               # (1, S) additive key bias

    # attention: static loop over heads only (batch handled by the grid);
    # each head slice is a full 128-lane slot, contexts are kept as register
    # values and concatenated once (no scratch round-trip).
    ctx_heads = []
    for h in range(NH):
        q_h = qkv[:, (0 * NH + h) * HDP:(0 * NH + h + 1) * HDP]
        k_h = qkv[:, (1 * NH + h) * HDP:(1 * NH + h + 1) * HDP]
        v_h = qkv[:, (2 * NH + h) * HDP:(2 * NH + h + 1) * HDP]
        s = jax.lax.dot_general(q_h, k_h, (((1,), (1,)), ((), ())),
                                preferred_element_type=jnp.float32)
        s = s * scale + bias                           # (S,S) + (1,S)
        s = s - jnp.max(s, axis=-1, keepdims=True)     # denom >= 1 afterwards
        p = jnp.exp(s)
        p = p * pl.reciprocal(jnp.sum(p, axis=-1, keepdims=True), approx=False)
        ctx_heads.append(jnp.dot(p, v_h, preferred_element_type=jnp.float32))
    ctx = jnp.concatenate(ctx_heads, axis=-1)          # (S, CTXP)

    attn = (jnp.dot(ctx, wo_ref[...], preferred_element_type=jnp.float32)
            + bo_ref[...])
    x1 = _layernorm(x + attn, ln1_g_ref[...], ln1_b_ref[...])

    hmid = jax.nn.gelu(
        jnp.dot(x1, w1_ref[...], preferred_element_type=jnp.float32)
        + b1_ref[...],
        approximate=True)
    ffn = (jnp.dot(hmid, w2_ref[...], preferred_element_type=jnp.float32)
           + b2_ref[...])
    x_new = _layernorm(x1 + ffn, ln2_g_ref[...], ln2_b_ref[...])

    act_ref[...] = x_new                               # carry to next layer step

    # last layer: single lane-dense store of the sequence output + fused pooler
    # (token 0 is row 0 of this batch tile — no selection matmul needed).
    @pl.when(l == N_LAYERS - 1)
    def _():
        seq_ref[...] = x_new
        pooled_ref[...] = jnp.tanh(
            jnp.dot(x_new[0:1, :], pool_w_ref[...],
                    preferred_element_type=jnp.float32) + pool_b_ref[...])


# ---- wrapper: padding / packing + pallas_call --------------------------------
def _pad_axis(a, axis, new_size):
    pads = [(0, 0)] * a.ndim
    pads[axis] = (0, new_size - a.shape[axis])
    return jnp.pad(a, pads)


def _pad_heads(a, axis):
    # split a NH*HD axis into per-head chunks and pad each chunk to HDP.
    parts = []
    for h in range(NH):
        idx = [slice(None)] * a.ndim
        idx[axis] = slice(h * HD, (h + 1) * HD)
        parts.append(_pad_axis(a[tuple(idx)], axis, HDP))
    return jnp.concatenate(parts, axis=axis)


def pack_params(p):
    """Logical params -> lane-dense, head-major padded kernel tensors."""
    wq = p["wqkv"][:, :, 0 * H:1 * H]
    wk = p["wqkv"][:, :, 1 * H:2 * H]
    wv = p["wqkv"][:, :, 2 * H:3 * H]
    wqkv = jnp.concatenate(
        [_pad_heads(wq, 2), _pad_heads(wk, 2), _pad_heads(wv, 2)], axis=2)
    wqkv = _pad_axis(wqkv, 1, HP)                       # (L, HP, QKVP)

    bq = p["bqkv"][:, 0 * H:1 * H]
    bk = p["bqkv"][:, 1 * H:2 * H]
    bv = p["bqkv"][:, 2 * H:3 * H]
    bqkv = jnp.concatenate(
        [_pad_heads(bq, 1), _pad_heads(bk, 1), _pad_heads(bv, 1)], axis=1)
    bqkv = bqkv[:, None, :]                             # (L, 1, QKVP)

    def vec(a, new):                                    # (L, n) -> (L, 1, new)
        return _pad_axis(a, 1, new)[:, None, :]

    return dict(
        emb_g=_pad_axis(p["emb_ln_g"], 1, HP),          # zero-padded gamma
        emb_b=_pad_axis(p["emb_ln_b"], 1, HP),
        wqkv=wqkv, bqkv=bqkv,
        wo=_pad_axis(_pad_heads(p["wo"], 1), 2, HP),    # (L, CTXP, HP)
        bo=vec(p["bo"], HP),
        ln1_g=vec(p["ln1_g"], HP), ln1_b=vec(p["ln1_b"], HP),
        w1=_pad_axis(_pad_axis(p["w1"], 1, HP), 2, FFP),
        b1=vec(p["b1"], FFP),
        w2=_pad_axis(_pad_axis(p["w2"], 1, FFP), 2, HP),
        b2=vec(p["b2"], HP),
        ln2_g=vec(p["ln2_g"], HP), ln2_b=vec(p["ln2_b"], HP),
        pool_w=_pad_axis(_pad_axis(p["pool_w"], 0, HP), 1, HP),
        pool_b=_pad_axis(p["pool_b"], 1, HP),
    )


def bert_forward(params, ids, mask, token_type_ids):
    # glue: embedding gathers + mask -> additive bias stay in plain JAX
    # (data-dependent gathers); everything dense is fused in the kernel.
    kp = pack_params(params)
    positions = jnp.arange(S, dtype=jnp.int32)
    x_sum = (params["word_emb"][ids]
             + params["pos_emb"][positions][None, :, :]
             + params["type_emb"][token_type_ids])               # (B, S, H)
    x_sum = jnp.pad(x_sum, ((0, 0), (0, 0), (0, HP - H)))        # (B, S, HP)
    attn_bias = ((1.0 - mask.astype(jnp.float32)) * -1e9)[:, None, :]  # (B,1,S)

    def _layer_spec(shape):
        return pl.BlockSpec((None,) + shape,
                            lambda b, l: (l,) + (0,) * len(shape))

    def _const_spec(shape):
        return pl.BlockSpec(shape, lambda b, l: (0,) * len(shape))

    grid_spec = pltpu.PrefetchScalarGridSpec(
        num_scalar_prefetch=0,
        grid=(B, N_LAYERS),
        in_specs=[
            pl.BlockSpec((None, S, HP), lambda b, l: (b, 0, 0)),   # x_sum
            pl.BlockSpec((None, 1, S), lambda b, l: (b, 0, 0)),    # attn bias
            _const_spec((1, HP)), _const_spec((1, HP)),            # emb LN
            _layer_spec((HP, QKVP)), _layer_spec((1, QKVP)),       # wqkv, bqkv
            _layer_spec((CTXP, HP)), _layer_spec((1, HP)),         # wo, bo
            _layer_spec((1, HP)), _layer_spec((1, HP)),            # ln1
            _layer_spec((HP, FFP)), _layer_spec((1, FFP)),         # w1, b1
            _layer_spec((FFP, HP)), _layer_spec((1, HP)),          # w2, b2
            _layer_spec((1, HP)), _layer_spec((1, HP)),            # ln2
            _const_spec((HP, HP)), _const_spec((1, HP)),           # pooler
        ],
        out_specs=[
            pl.BlockSpec((None, S, HP), lambda b, l: (b, 0, 0)),   # seq out
            pl.BlockSpec((None, 1, HP), lambda b, l: (b, 0, 0)),   # pooled out
        ],
        scratch_shapes=[pltpu.VMEM((S, HP), jnp.float32)],         # activation carry
    )

    seq_p, pooled_p = pl.pallas_call(
        bert_layer_kernel,
        out_shape=(jax.ShapeDtypeStruct((B, S, HP), jnp.float32),
                   jax.ShapeDtypeStruct((B, 1, HP), jnp.float32)),
        grid_spec=grid_spec,
        compiler_params=pltpu.CompilerParams(
            dimension_semantics=("parallel", "arbitrary")),
    )(x_sum, attn_bias,
      kp["emb_g"], kp["emb_b"],
      kp["wqkv"], kp["bqkv"], kp["wo"], kp["bo"],
      kp["ln1_g"], kp["ln1_b"],
      kp["w1"], kp["b1"], kp["w2"], kp["b2"],
      kp["ln2_g"], kp["ln2_b"],
      kp["pool_w"], kp["pool_b"])

    return seq_p[:, :, :H], pooled_p[:, 0, :H]


# ---- pure-JAX reference (for correctness check) ------------------------------
def bert_forward_ref(params, ids, mask, token_type_ids):
    positions = jnp.arange(S, dtype=jnp.int32)
    x = (params["word_emb"][ids]
         + params["pos_emb"][positions][None, :, :]
         + params["type_emb"][token_type_ids])

    def ln(t, g, b):
        mu = t.mean(-1, keepdims=True)
        var = ((t - mu) ** 2).mean(-1, keepdims=True)
        return (t - mu) * jax.lax.rsqrt(var + EPS) * g + b

    x = ln(x, params["emb_ln_g"][0], params["emb_ln_b"][0])
    bias = ((1.0 - mask.astype(jnp.float32)) * -1e9)[:, None, None, :]
    for l in range(N_LAYERS):
        qkv = x @ params["wqkv"][l] + params["bqkv"][l]
        q, k, v = jnp.split(qkv, 3, axis=-1)
        q = q.reshape(B, S, NH, HD).transpose(0, 2, 1, 3)
        k = k.reshape(B, S, NH, HD).transpose(0, 2, 1, 3)
        v = v.reshape(B, S, NH, HD).transpose(0, 2, 1, 3)
        s = (q @ k.transpose(0, 1, 3, 2)) / math.sqrt(HD) + bias
        p = jax.nn.softmax(s, axis=-1)
        ctx = (p @ v).transpose(0, 2, 1, 3).reshape(B, S, H)
        attn = ctx @ params["wo"][l] + params["bo"][l]
        x1 = ln(x + attn, params["ln1_g"][l], params["ln1_b"][l])
        hmid = jax.nn.gelu(x1 @ params["w1"][l] + params["b1"][l],
                           approximate=True)
        ffn = hmid @ params["w2"][l] + params["b2"][l]
        x = ln(x1 + ffn, params["ln2_g"][l], params["ln2_b"][l])
    pooled = jnp.tanh(x[:, 0, :] @ params["pool_w"] + params["pool_b"][0])
    return x, pooled


# ---- parameter construction (deterministic, synthetic) ----------------------
def init_params(key):
    def nrm(k, shape, scale=0.02):
        return (scale * jax.random.normal(k, shape)).astype(jnp.float32)

    keys = iter(jax.random.split(key, 32))
    return {
        "word_emb": nrm(next(keys), (VOCAB, H)),
        "pos_emb": nrm(next(keys), (MAX_POS, H)),
        "type_emb": nrm(next(keys), (TYPE_VOCAB, H)),
        "emb_ln_g": jnp.ones((1, H), jnp.float32),
        "emb_ln_b": jnp.zeros((1, H), jnp.float32),
        "wqkv": nrm(next(keys), (N_LAYERS, H, 3 * H)),
        "bqkv": jnp.zeros((N_LAYERS, 3 * H), jnp.float32),
        "wo": nrm(next(keys), (N_LAYERS, H, H)),
        "bo": jnp.zeros((N_LAYERS, H), jnp.float32),
        "ln1_g": jnp.ones((N_LAYERS, H), jnp.float32),
        "ln1_b": jnp.zeros((N_LAYERS, H), jnp.float32),
        "w1": nrm(next(keys), (N_LAYERS, H, FF)),
        "b1": jnp.zeros((N_LAYERS, FF), jnp.float32),
        "w2": nrm(next(keys), (N_LAYERS, FF, H)),
        "b2": jnp.zeros((N_LAYERS, H), jnp.float32),
        "ln2_g": jnp.ones((N_LAYERS, H), jnp.float32),
        "ln2_b": jnp.zeros((N_LAYERS, H), jnp.float32),
        "pool_w": nrm(next(keys), (H, H)),
        "pool_b": jnp.zeros((1, H), jnp.float32),
    }


# ---- faithful NERModel wrapper ----------------------------------------------
class NERModel:
    def __init__(self, params):
        self.bert = params  # stands in for BertModel.from_pretrained(path)

    def forward(self, ids, mask, token_type_ids):
        # TODO(synk): the reference NERModel.forward is a stub returning None;
        # the underlying BERT encoder compute lives in bert_forward() above.
        return None

    def loss(self, output, label, mask_ids):
        return None


if __name__ == "__main__":
    key = jax.random.PRNGKey(0)
    k_params, k_ids = jax.random.split(key)
    params = init_params(k_params)

    ids = jax.random.randint(k_ids, (B, S), 0, VOCAB, dtype=jnp.int32)
    # second sequence padded after position 5
    mask = jnp.where(jnp.arange(S)[None, :] < jnp.array([[S], [6]]), 1, 0
                     ).astype(jnp.int32)
    token_type_ids = jnp.zeros((B, S), dtype=jnp.int32)

    model = NERModel(params)
    assert model.forward(ids, mask, token_type_ids) is None  # stub semantics

    seq_out, pooled_out = bert_forward(params, ids, mask, token_type_ids)
    jax.block_until_ready((seq_out, pooled_out))
    assert seq_out.shape == (B, S, H) and pooled_out.shape == (B, H)

    # correctness vs pure-JAX reference (exact-reciprocal softmax + exact
    # zero-padding -> tight tolerance)
    seq_ref, pooled_ref = bert_forward_ref(params, ids, mask, token_type_ids)
    assert jnp.allclose(seq_out, seq_ref, atol=2e-3, rtol=2e-3)
    assert jnp.allclose(pooled_out, pooled_ref, atol=2e-3, rtol=2e-3)

    print("KERNEL_OK")
</pallas_src>

<mosaic_0001>
module attributes {stable_mosaic.version = 11 : i64} {
  func.func @bert_layer_kernel(%arg0: i32, %arg1: i32, %arg2: memref<1x8x128xf32, #tpu.memory_space<vmem>>, %arg3: memref<1x1x8xf32, #tpu.memory_space<vmem>>, %arg4: memref<1x128xf32, #tpu.memory_space<vmem>>, %arg5: memref<1x128xf32, #tpu.memory_space<vmem>>, %arg6: memref<1x128x768xf32, #tpu.memory_space<vmem>>, %arg7: memref<1x1x768xf32, #tpu.memory_space<vmem>>, %arg8: memref<1x256x128xf32, #tpu.memory_space<vmem>>, %arg9: memref<1x1x128xf32, #tpu.memory_space<vmem>>, %arg10: memref<1x1x128xf32, #tpu.memory_space<vmem>>, %arg11: memref<1x1x128xf32, #tpu.memory_space<vmem>>, %arg12: memref<1x128x128xf32, #tpu.memory_space<vmem>>, %arg13: memref<1x1x128xf32, #tpu.memory_space<vmem>>, %arg14: memref<1x128x128xf32, #tpu.memory_space<vmem>>, %arg15: memref<1x1x128xf32, #tpu.memory_space<vmem>>, %arg16: memref<1x1x128xf32, #tpu.memory_space<vmem>>, %arg17: memref<1x1x128xf32, #tpu.memory_space<vmem>>, %arg18: memref<128x128xf32, #tpu.memory_space<vmem>>, %arg19: memref<1x128xf32, #tpu.memory_space<vmem>>, %arg20: memref<1x8x128xf32, #tpu.memory_space<vmem>>, %arg21: memref<1x1x128xf32, #tpu.memory_space<vmem>>, %arg22: memref<8x128xf32, #tpu.memory_space<vmem>>) attributes {dimension_semantics = [#tpu.dimension_semantics<parallel>, #tpu.dimension_semantics<arbitrary>], iteration_bounds = array<i64: 2, 2>, scalar_prefetch = 0 : i64, scratch_operands = 1 : i64, tpu.core_type = #tpu.core_type<tc>, window_params = [{transform_indices = @transform_0, window_bounds = array<i64: 1, 8, 128>}, {transform_indices = @transform_1, window_bounds = array<i64: 1, 1, 8>}, {pipeline_mode = #tpu.pipeline_mode<synchronous>, transform_indices = @transform_2, window_bounds = array<i64: 1, 128>}, {pipeline_mode = #tpu.pipeline_mode<synchronous>, transform_indices = @transform_3, window_bounds = array<i64: 1, 128>}, {transform_indices = @transform_4, window_bounds = array<i64: 1, 128, 768>}, {transform_indices = @transform_5, window_bounds = array<i64: 1, 1, 768>}, {transform_indices = @transform_6, window_bounds = array<i64: 1, 256, 128>}, {transform_indices = @transform_7, window_bounds = array<i64: 1, 1, 128>}, {transform_indices = @transform_8, window_bounds = array<i64: 1, 1, 128>}, {transform_indices = @transform_9, window_bounds = array<i64: 1, 1, 128>}, {transform_indices = @transform_10, window_bounds = array<i64: 1, 128, 128>}, {transform_indices = @transform_11, window_bounds = array<i64: 1, 1, 128>}, {transform_indices = @transform_12, window_bounds = array<i64: 1, 128, 128>}, {transform_indices = @transform_13, window_bounds = array<i64: 1, 1, 128>}, {transform_indices = @transform_14, window_bounds = array<i64: 1, 1, 128>}, {transform_indices = @transform_15, window_bounds = array<i64: 1, 1, 128>}, {pipeline_mode = #tpu.pipeline_mode<synchronous>, transform_indices = @transform_16, window_bounds = array<i64: 128, 128>}, {pipeline_mode = #tpu.pipeline_mode<synchronous>, transform_indices = @transform_17, window_bounds = array<i64: 1, 128>}, {transform_indices = @transform_18, window_bounds = array<i64: 1, 8, 128>}, {transform_indices = @transform_19, window_bounds = array<i64: 1, 1, 128>}]} {
    %c0_i32 = arith.constant 0 : i32
    %0 = arith.cmpi eq, %arg1, %c0_i32 : i32
    %1 = arith.extui %0 : i1 to i32
    %c0_i32_0 = arith.constant 0 : i32
    %2 = arith.cmpi ne, %1, %c0_i32_0 : i32
    scf.if %2 {
      %c0_71 = arith.constant 0 : index
      %c0_72 = arith.constant 0 : index
      %c0_73 = arith.constant 0 : index
      %144 = vector.load %arg2[%c0_71, %c0_72, %c0_73] : memref<1x8x128xf32, #tpu.memory_space<vmem>>, vector<1x8x128xf32>
      %145 = vector.shape_cast %144 : vector<1x8x128xf32> to vector<8x128xf32>
      %c0_74 = arith.constant 0 : index
      %c0_75 = arith.constant 0 : index
      %146 = vector.load %arg4[%c0_74, %c0_75] : memref<1x128xf32, #tpu.memory_space<vmem>>, vector<1x128xf32>
      %c0_76 = arith.constant 0 : index
      %c0_77 = arith.constant 0 : index
      %147 = vector.load %arg5[%c0_76, %c0_77] : memref<1x128xf32, #tpu.memory_space<vmem>>, vector<1x128xf32>
      %cst_78 = arith.constant dense<0.000000e+00> : vector<8xf32>
      %148 = vector.multi_reduction <add>, %145, %cst_78 [1] : vector<8x128xf32> to vector<8xf32>
      %149 = vector.shape_cast %148 : vector<8xf32> to vector<8x1xf32>
      %cst_79 = arith.constant 3.125000e-02 : f32
      %150 = vector.broadcast %cst_79 : f32 to vector<8x1xf32>
      %151 = arith.mulf %149, %150 : vector<8x1xf32>
      %152 = arith.mulf %145, %145 : vector<8x128xf32>
      %cst_80 = arith.constant dense<0.000000e+00> : vector<8xf32>
      %153 = vector.multi_reduction <add>, %152, %cst_80 [1] : vector<8x128xf32> to vector<8xf32>
      %154 = vector.shape_cast %153 : vector<8xf32> to vector<8x1xf32>
      %cst_81 = arith.constant 3.125000e-02 : f32
      %155 = vector.broadcast %cst_81 : f32 to vector<8x1xf32>
      %156 = arith.mulf %154, %155 : vector<8x1xf32>
      %157 = arith.mulf %151, %151 : vector<8x1xf32>
      %158 = arith.subf %156, %157 : vector<8x1xf32>
      %159 = vector.broadcast %151 : vector<8x1xf32> to vector<8x128xf32>
      %160 = arith.subf %145, %159 : vector<8x128xf32>
      %cst_82 = arith.constant 9.99999996E-13 : f32
      %161 = vector.broadcast %cst_82 : f32 to vector<8x1xf32>
      %162 = arith.addf %158, %161 : vector<8x1xf32>
      %163 = math.rsqrt %162 : vector<8x1xf32>
      %164 = vector.broadcast %163 : vector<8x1xf32> to vector<8x128xf32>
      %165 = arith.mulf %160, %164 : vector<8x128xf32>
      %166 = vector.broadcast %146 : vector<1x128xf32> to vector<8x128xf32>
      %167 = arith.mulf %165, %166 : vector<8x128xf32>
      %168 = vector.broadcast %147 : vector<1x128xf32> to vector<8x128xf32>
      %169 = arith.addf %167, %168 : vector<8x128xf32>
      %c0_83 = arith.constant 0 : index
      %c0_84 = arith.constant 0 : index
      %170 = vector.load %arg22[%c0_83, %c0_84] : memref<8x128xf32, #tpu.memory_space<vmem>>, vector<8x128xf32>
      tpu.vector_store %arg22[%c0_83, %c0_84], %169 {strides = array<i32>} : memref<8x128xf32, #tpu.memory_space<vmem>>, vector<8x128xf32>,
    } else {
    }
    %c0 = arith.constant 0 : index
    %c0_1 = arith.constant 0 : index
    %3 = vector.load %arg22[%c0, %c0_1] : memref<8x128xf32, #tpu.memory_space<vmem>>, vector<8x128xf32>
    %c0_2 = arith.constant 0 : index
    %c0_3 = arith.constant 0 : index
    %c0_4 = arith.constant 0 : index
    %4 = vector.load %arg6[%c0_2, %c0_3, %c0_4] : memref<1x128x768xf32, #tpu.memory_space<vmem>>, vector<1x128x768xf32>
    %5 = vector.shape_cast %4 : vector<1x128x768xf32> to vector<128x768xf32>
    %cst = arith.constant dense<0.000000e+00> : vector<8x768xf32>
    %6 = tpu.matmul %3, %5, %cst {dimension_numbers = #tpu.dot_dimension_numbers<[1], [0], [0], [1], [0, 0, 1, 1], [], []>} : vector<8x128xf32>, vector<128x768xf32>, vector<8x768xf32> -> vector<8x768xf32>
    %c0_5 = arith.constant 0 : index
    %c0_6 = arith.constant 0 : index
    %c0_7 = arith.constant 0 : index
    %7 = vector.load %arg7[%c0_5, %c0_6, %c0_7] : memref<1x1x768xf32, #tpu.memory_space<vmem>>, vector<1x1x768xf32>
    %8 = vector.shape_cast %7 : vector<1x1x768xf32> to vector<1x768xf32>
    %9 = vector.broadcast %8 : vector<1x768xf32> to vector<8x768xf32>
    %10 = arith.addf %6, %9 : vector<8x768xf32>
    %c0_8 = arith.constant 0 : index
    %c0_9 = arith.constant 0 : index
    %c0_10 = arith.constant 0 : index
    %11 = vector.load %arg3[%c0_8, %c0_9, %c0_10] : memref<1x1x8xf32, #tpu.memory_space<vmem>>, vector<1x1x8xf32>
    %12 = vector.shape_cast %11 : vector<1x1x8xf32> to vector<1x8xf32>
    %13 = vector.extract_strided_slice %10 {offsets = [0, 0], sizes = [8, 128], strides = [1, 1]} : vector<8x768xf32> to vector<8x128xf32>
    %14 = vector.extract_strided_slice %10 {offsets = [0, 256], sizes = [8, 128], strides = [1, 1]} : vector<8x768xf32> to vector<8x128xf32>
    %15 = vector.extract_strided_slice %10 {offsets = [0, 512], sizes = [8, 128], strides = [1, 1]} : vector<8x768xf32> to vector<8x128xf32>
    %cst_11 = arith.constant dense<0.000000e+00> : vector<8x8xf32>
    %16 = tpu.matmul %13, %14, %cst_11 {dimension_numbers = #tpu.dot_dimension_numbers<[1], [1], [0], [0], [0, 0, 1, 0], [], []>} : vector<8x128xf32>, vector<8x128xf32>, vector<8x8xf32> -> vector<8x8xf32>
    %cst_12 = arith.constant 2.500000e-01 : f32
    %17 = vector.broadcast %cst_12 : f32 to vector<8x8xf32>
    %18 = arith.mulf %16, %17 : vector<8x8xf32>
    %19 = vector.broadcast %12 : vector<1x8xf32> to vector<8x8xf32>
    %20 = arith.addf %18, %19 : vector<8x8xf32>
    %cst_13 = arith.constant dense<0xFF800000> : vector<8xf32>
    %21 = vector.multi_reduction <maximumf>, %20, %cst_13 [1] : vector<8x8xf32> to vector<8xf32>
    %22 = vector.shape_cast %21 : vector<8xf32> to vector<8x1xf32>
    %23 = vector.broadcast %22 : vector<8x1xf32> to vector<8x8xf32>
    %24 = arith.subf %20, %23 : vector<8x8xf32>
    %25 = math.exp %24 : vector<8x8xf32>
    %cst_14 = arith.constant dense<0.000000e+00> : vector<8xf32>
    %26 = vector.multi_reduction <add>, %25, %cst_14 [1] : vector<8x8xf32> to vector<8xf32>
    %27 = vector.shape_cast %26 : vector<8xf32> to vector<8x1xf32>
    %28 = tpu.reciprocal %27 : vector<8x1xf32> -> vector<8x1xf32>
    %29 = vector.broadcast %28 : vector<8x1xf32> to vector<8x8xf32>
    %30 = arith.mulf %25, %29 : vector<8x8xf32>
    %cst_15 = arith.constant dense<0.000000e+00> : vector<8x128xf32>
    %31 = tpu.matmul %30, %15, %cst_15 {dimension_numbers = #tpu.dot_dimension_numbers<[1], [0], [0], [1], [0, 0, 1, 1], [], []>} : vector<8x8xf32>, vector<8x128xf32>, vector<8x128xf32> -> vector<8x128xf32>
    %32 = vector.extract_strided_slice %10 {offsets = [0, 128], sizes = [8, 128], strides = [1, 1]} : vector<8x768xf32> to vector<8x128xf32>
    %33 = vector.extract_strided_slice %10 {offsets = [0, 384], sizes = [8, 128], strides = [1, 1]} : vector<8x768xf32> to vector<8x128xf32>
    %34 = vector.extract_strided_slice %10 {offsets = [0, 640], sizes = [8, 128], strides = [1, 1]} : vector<8x768xf32> to vector<8x128xf32>
    %cst_16 = arith.constant dense<0.000000e+00> : vector<8x8xf32>
    %35 = tpu.matmul %32, %33, %cst_16 {dimension_numbers = #tpu.dot_dimension_numbers<[1], [1], [0], [0], [0, 0, 1, 0], [], []>} : vector<8x128xf32>, vector<8x128xf32>, vector<8x8xf32> -> vector<8x8xf32>
    %cst_17 = arith.constant 2.500000e-01 : f32
    %36 = vector.broadcast %cst_17 : f32 to vector<8x8xf32>
    %37 = arith.mulf %35, %36 : vector<8x8xf32>
    %38 = vector.broadcast %12 : vector<1x8xf32> to vector<8x8xf32>
    %39 = arith.addf %37, %38 : vector<8x8xf32>
    %cst_18 = arith.constant dense<0xFF800000> : vector<8xf32>
    %40 = vector.multi_reduction <maximumf>, %39, %cst_18 [1] : vector<8x8xf32> to vector<8xf32>
    %41 = vector.shape_cast %40 : vector<8xf32> to vector<8x1xf32>
    %42 = vector.broadcast %41 : vector<8x1xf32> to vector<8x8xf32>
    %43 = arith.subf %39, %42 : vector<8x8xf32>
    %44 = math.exp %43 : vector<8x8xf32>
    %cst_19 = arith.constant dense<0.000000e+00> : vector<8xf32>
    %45 = vector.multi_reduction <add>, %44, %cst_19 [1] : vector<8x8xf32> to vector<8xf32>
    %46 = vector.shape_cast %45 : vector<8xf32> to vector<8x1xf32>
    %47 = tpu.reciprocal %46 : vector<8x1xf32> -> vector<8x1xf32>
    %48 = vector.broadcast %47 : vector<8x1xf32> to vector<8x8xf32>
    %49 = arith.mulf %44, %48 : vector<8x8xf32>
    %cst_20 = arith.constant dense<0.000000e+00> : vector<8x128xf32>
    %50 = tpu.matmul %49, %34, %cst_20 {dimension_numbers = #tpu.dot_dimension_numbers<[1], [0], [0], [1], [0, 0, 1, 1], [], []>} : vector<8x8xf32>, vector<8x128xf32>, vector<8x128xf32> -> vector<8x128xf32>
    %51 = tpu.concatenate %31, %50 in 1 : vector<8x128xf32>, vector<8x128xf32> -> vector<8x256xf32>
    %c0_21 = arith.constant 0 : index
    %c0_22 = arith.constant 0 : index
    %c0_23 = arith.constant 0 : index
    %52 = vector.load %arg8[%c0_21, %c0_22, %c0_23] : memref<1x256x128xf32, #tpu.memory_space<vmem>>, vector<1x256x128xf32>
    %53 = vector.shape_cast %52 : vector<1x256x128xf32> to vector<256x128xf32>
    %cst_24 = arith.constant dense<0.000000e+00> : vector<8x128xf32>
    %54 = tpu.matmul %51, %53, %cst_24 {dimension_numbers = #tpu.dot_dimension_numbers<[1], [0], [0], [1], [0, 0, 1, 1], [], []>} : vector<8x256xf32>, vector<256x128xf32>, vector<8x128xf32> -> vector<8x128xf32>
    %c0_25 = arith.constant 0 : index
    %c0_26 = arith.constant 0 : index
    %c0_27 = arith.constant 0 : index
    %55 = vector.load %arg9[%c0_25, %c0_26, %c0_27] : memref<1x1x128xf32, #tpu.memory_space<vmem>>, vector<1x1x128xf32>
    %56 = vector.shape_cast %55 : vector<1x1x128xf32> to vector<1x128xf32>
    %57 = vector.broadcast %56 : vector<1x128xf32> to vector<8x128xf32>
    %58 = arith.addf %54, %57 : vector<8x128xf32>
    %59 = arith.addf %3, %58 : vector<8x128xf32>
    %c0_28 = arith.constant 0 : index
    %c0_29 = arith.constant 0 : index
    %c0_30 = arith.constant 0 : index
    %60 = vector.load %arg10[%c0_28, %c0_29, %c0_30] : memref<1x1x128xf32, #tpu.memory_space<vmem>>, vector<1x1x128xf32>
    %61 = vector.shape_cast %60 : vector<1x1x128xf32> to vector<1x128xf32>
    %c0_31 = arith.constant 0 : index
    %c0_32 = arith.constant 0 : index
    %c0_33 = arith.constant 0 : index
    %62 = vector.load %arg11[%c0_31, %c0_32, %c0_33] : memref<1x1x128xf32, #tpu.memory_space<vmem>>, vector<1x1x128xf32>
    %63 = vector.shape_cast %62 : vector<1x1x128xf32> to vector<1x128xf32>
    %cst_34 = arith.constant dense<0.000000e+00> : vector<8xf32>
    %64 = vector.multi_reduction <add>, %59, %cst_34 [1] : vector<8x128xf32> to vector<8xf32>
    %65 = vector.shape_cast %64 : vector<8xf32> to vector<8x1xf32>
    %cst_35 = arith.constant 3.125000e-02 : f32
    %66 = vector.broadcast %cst_35 : f32 to vector<8x1xf32>
    %67 = arith.mulf %65, %66 : vector<8x1xf32>
    %68 = arith.mulf %59, %59 : vector<8x128xf32>
    %cst_36 = arith.constant dense<0.000000e+00> : vector<8xf32>
    %69 = vector.multi_reduction <add>, %68, %cst_36 [1] : vector<8x128xf32> to vector<8xf32>
    %70 = vector.shape_cast %69 : vector<8xf32> to vector<8x1xf32>
    %cst_37 = arith.constant 3.125000e-02 : f32
    %71 = vector.broadcast %cst_37 : f32 to vector<8x1xf32>
    %72 = arith.mulf %70, %71 : vector<8x1xf32>
    %73 = arith.mulf %67, %67 : vector<8x1xf32>
    %74 = arith.subf %72, %73 : vector<8x1xf32>
    %75 = vector.broadcast %67 : vector<8x1xf32> to vector<8x128xf32>
    %76 = arith.subf %59, %75 : vector<8x128xf32>
    %cst_38 = arith.constant 9.99999996E-13 : f32
    %77 = vector.broadcast %cst_38 : f32 to vector<8x1xf32>
    %78 = arith.addf %74, %77 : vector<8x1xf32>
    %79 = math.rsqrt %78 : vector<8x1xf32>
    %80 = vector.broadcast %79 : vector<8x1xf32> to vector<8x128xf32>
    %81 = arith.mulf %76, %80 : vector<8x128xf32>
    %82 = vector.broadcast %61 : vector<1x128xf32> to vector<8x128xf32>
    %83 = arith.mulf %81, %82 : vector<8x128xf32>
    %84 = vector.broadcast %63 : vector<1x128xf32> to vector<8x128xf32>
    %85 = arith.addf %83, %84 : vector<8x128xf32>
    %c0_39 = arith.constant 0 : index
    %c0_40 = arith.constant 0 : index
    %c0_41 = arith.constant 0 : index
    %86 = vector.load %arg12[%c0_39, %c0_40, %c0_41] : memref<1x128x128xf32, #tpu.memory_space<vmem>>, vector<1x128x128xf32>
    %87 = vector.shape_cast %86 : vector<1x128x128xf32> to vector<128x128xf32>
    %cst_42 = arith.constant dense<0.000000e+00> : vector<8x128xf32>
    %88 = tpu.matmul %85, %87, %cst_42 {dimension_numbers = #tpu.dot_dimension_numbers<[1], [0], [0], [1], [0, 0, 1, 1], [], []>} : vector<8x128xf32>, vector<128x128xf32>, vector<8x128xf32> -> vector<8x128xf32>
    %c0_43 = arith.constant 0 : index
    %c0_44 = arith.constant 0 : index
    %c0_45 = arith.constant 0 : index
    %89 = vector.load %arg13[%c0_43, %c0_44, %c0_45] : memref<1x1x128xf32, #tpu.memory_space<vmem>>, vector<1x1x128xf32>
    %90 = vector.shape_cast %89 : vector<1x1x128xf32> to vector<1x128xf32>
    %91 = vector.broadcast %90 : vector<1x128xf32> to vector<8x128xf32>
    %92 = arith.addf %88, %91 : vector<8x128xf32>
    %93 = arith.mulf %92, %92 : vector<8x128xf32>
    %94 = arith.mulf %92, %93 : vector<8x128xf32>
    %cst_46 = arith.constant 4.471500e-02 : f32
    %95 = vector.broadcast %cst_46 : f32 to vector<8x128xf32>
    %96 = arith.mulf %95, %94 : vector<8x128xf32>
    %97 = arith.addf %92, %96 : vector<8x128xf32>
    %cst_47 = arith.constant 0.797884583 : f32
    %98 = vector.broadcast %cst_47 : f32 to vector<8x128xf32>
    %99 = arith.mulf %98, %97 : vector<8x128xf32>
    %100 = math.tanh %99 : vector<8x128xf32>
    %cst_48 = arith.constant 1.000000e+00 : f32
    %101 = vector.broadcast %cst_48 : f32 to vector<8x128xf32>
    %102 = arith.addf %101, %100 : vector<8x128xf32>
    %cst_49 = arith.constant 5.000000e-01 : f32
    %103 = vector.broadcast %cst_49 : f32 to vector<8x128xf32>
    %104 = arith.mulf %103, %102 : vector<8x128xf32>
    %105 = arith.mulf %92, %104 : vector<8x128xf32>
    %c0_50 = arith.constant 0 : index
    %c0_51 = arith.constant 0 : index
    %c0_52 = arith.constant 0 : index
    %106 = vector.load %arg14[%c0_50, %c0_51, %c0_52] : memref<1x128x128xf32, #tpu.memory_space<vmem>>, vector<1x128x128xf32>
    %107 = vector.shape_cast %106 : vector<1x128x128xf32> to vector<128x128xf32>
    %cst_53 = arith.constant dense<0.000000e+00> : vector<8x128xf32>
    %108 = tpu.matmul %105, %107, %cst_53 {dimension_numbers = #tpu.dot_dimension_numbers<[1], [0], [0], [1], [0, 0, 1, 1], [], []>} : vector<8x128xf32>, vector<128x128xf32>, vector<8x128xf32> -> vector<8x128xf32>
    %c0_54 = arith.constant 0 : index
    %c0_55 = arith.constant 0 : index
    %c0_56 = arith.constant 0 : index
    %109 = vector.load %arg15[%c0_54, %c0_55, %c0_56] : memref<1x1x128xf32, #tpu.memory_space<vmem>>, vector<1x1x128xf32>
    %110 = vector.shape_cast %109 : vector<1x1x128xf32> to vector<1x128xf32>
    %111 = vector.broadcast %110 : vector<1x128xf32> to vector<8x128xf32>
    %112 = arith.addf %108, %111 : vector<8x128xf32>
    %113 = arith.addf %85, %112 : vector<8x128xf32>
    %c0_57 = arith.constant 0 : index
    %c0_58 = arith.constant 0 : index
    %c0_59 = arith.constant 0 : index
    %114 = vector.load %arg16[%c0_57, %c0_58, %c0_59] : memref<1x1x128xf32, #tpu.memory_space<vmem>>, vector<1x1x128xf32>
    %115 = vector.shape_cast %114 : vector<1x1x128xf32> to vector<1x128xf32>
    %c0_60 = arith.constant 0 : index
    %c0_61 = arith.constant 0 : index
    %c0_62 = arith.constant 0 : index
    %116 = vector.load %arg17[%c0_60, %c0_61, %c0_62] : memref<1x1x128xf32, #tpu.memory_space<vmem>>, vector<1x1x128xf32>
    %117 = vector.shape_cast %116 : vector<1x1x128xf32> to vector<1x128xf32>
    %cst_63 = arith.constant dense<0.000000e+00> : vector<8xf32>
    %118 = vector.multi_reduction <add>, %113, %cst_63 [1] : vector<8x128xf32> to vector<8xf32>
    %119 = vector.shape_cast %118 : vector<8xf32> to vector<8x1xf32>
    %cst_64 = arith.constant 3.125000e-02 : f32
    %120 = vector.broadcast %cst_64 : f32 to vector<8x1xf32>
    %121 = arith.mulf %119, %120 : vector<8x1xf32>
    %122 = arith.mulf %113, %113 : vector<8x128xf32>
    %cst_65 = arith.constant dense<0.000000e+00> : vector<8xf32>
    %123 = vector.multi_reduction <add>, %122, %cst_65 [1] : vector<8x128xf32> to vector<8xf32>
    %124 = vector.shape_cast %123 : vector<8xf32> to vector<8x1xf32>
    %cst_66 = arith.constant 3.125000e-02 : f32
    %125 = vector.broadcast %cst_66 : f32 to vector<8x1xf32>
    %126 = arith.mulf %124, %125 : vector<8x1xf32>
    %127 = arith.mulf %121, %121 : vector<8x1xf32>
    %128 = arith.subf %126, %127 : vector<8x1xf32>
    %129 = vector.broadcast %121 : vector<8x1xf32> to vector<8x128xf32>
    %130 = arith.subf %113, %129 : vector<8x128xf32>
    %cst_67 = arith.constant 9.99999996E-13 : f32
    %131 = vector.broadcast %cst_67 : f32 to vector<8x1xf32>
    %132 = arith.addf %128, %131 : vector<8x1xf32>
    %133 = math.rsqrt %132 : vector<8x1xf32>
    %134 = vector.broadcast %133 : vector<8x1xf32> to vector<8x128xf32>
    %135 = arith.mulf %130, %134 : vector<8x128xf32>
    %136 = vector.broadcast %115 : vector<1x128xf32> to vector<8x128xf32>
    %137 = arith.mulf %135, %136 : vector<8x128xf32>
    %138 = vector.broadcast %117 : vector<1x128xf32> to vector<8x128xf32>
    %139 = arith.addf %137, %138 : vector<8x128xf32>
    %c0_68 = arith.constant 0 : index
    %c0_69 = arith.constant 0 : index
    %140 = vector.load %arg22[%c0_68, %c0_69] : memref<8x128xf32, #tpu.memory_space<vmem>>, vector<8x128xf32>
    tpu.vector_store %arg22[%c0_68, %c0_69], %139 {strides = array<i32>} : memref<8x128xf32, #tpu.memory_space<vmem>>, vector<8x128xf32>,
    %c1_i32 = arith.constant 1 : i32
    %141 = arith.cmpi eq, %arg1, %c1_i32 : i32
    %142 = arith.extui %141 : i1 to i32
    %c0_i32_70 = arith.constant 0 : i32
    %143 = arith.cmpi ne, %142, %c0_i32_70 : i32
    scf.if %143 {
      %c0_71 = arith.constant 0 : index
      %c0_72 = arith.constant 0 : index
      %c0_73 = arith.constant 0 : index
      %144 = vector.load %arg20[%c0_71, %c0_72, %c0_73] : memref<1x8x128xf32, #tpu.memory_space<vmem>>, vector<1x8x128xf32>
      %145 = vector.shape_cast %144 : vector<1x8x128xf32> to vector<8x128xf32>
      %146 = vector.shape_cast %139 : vector<8x128xf32> to vector<1x8x128xf32>
      tpu.vector_store %arg20[%c0_71, %c0_72, %c0_73], %146 {strides = array<i32>} : memref<1x8x128xf32, #tpu.memory_space<vmem>>, vector<1x8x128xf32>,
      %147 = vector.extract_strided_slice %139 {offsets = [0, 0], sizes = [1, 128], strides = [1, 1]} : vector<8x128xf32> to vector<1x128xf32>
      %c0_74 = arith.constant 0 : index
      %c0_75 = arith.constant 0 : index
      %148 = vector.load %arg18[%c0_74, %c0_75] : memref<128x128xf32, #tpu.memory_space<vmem>>, vector<128x128xf32>
      %cst_76 = arith.constant dense<0.000000e+00> : vector<1x128xf32>
      %149 = tpu.matmul %147, %148, %cst_76 {dimension_numbers = #tpu.dot_dimension_numbers<[1], [0], [0], [1], [0, 0, 1, 1], [], []>} : vector<1x128xf32>, vector<128x128xf32>, vector<1x128xf32> -> vector<1x128xf32>
      %c0_77 = arith.constant 0 : index
      %c0_78 = arith.constant 0 : index
      %150 = vector.load %arg19[%c0_77, %c0_78] : memref<1x128xf32, #tpu.memory_space<vmem>>, vector<1x128xf32>
      %151 = arith.addf %149, %150 : vector<1x128xf32>
      %152 = math.tanh %151 : vector<1x128xf32>
      %c0_79 = arith.constant 0 : index
      %c0_80 = arith.constant 0 : index
      %c0_81 = arith.constant 0 : index
      %153 = vector.load %arg21[%c0_79, %c0_80, %c0_81] : memref<1x1x128xf32, #tpu.memory_space<vmem>>, vector<1x1x128xf32>
      %154 = vector.shape_cast %153 : vector<1x1x128xf32> to vector<1x128xf32>
      %155 = vector.shape_cast %152 : vector<1x128xf32> to vector<1x1x128xf32>
      tpu.vector_store %arg21[%c0_79, %c0_80, %c0_81], %155 {strides = array<i32>} : memref<1x1x128xf32, #tpu.memory_space<vmem>>, vector<1x1x128xf32>,
    } else {
    }
    return
  }
  func.func @transform_0(%arg0: i32, %arg1: i32) -> (i32, i32, i32) {
    %c0_i32 = arith.constant 0 : i32
    %c0_i32_0 = arith.constant 0 : i32
    %c0_i32_1 = arith.constant 0 : i32
    return %arg0, %c0_i32, %c0_i32_0 : i32, i32, i32
  }
  func.func @transform_1(%arg0: i32, %arg1: i32) -> (i32, i32, i32) {
    %c0_i32 = arith.constant 0 : i32
    %c0_i32_0 = arith.constant 0 : i32
    %c0_i32_1 = arith.constant 0 : i32
    return %arg0, %c0_i32, %c0_i32_0 : i32, i32, i32
  }
  func.func @transform_2(%arg0: i32, %arg1: i32) -> (i32, i32) {
    %c0_i32 = arith.constant 0 : i32
    %c0_i32_0 = arith.constant 0 : i32
    %c0_i32_1 = arith.constant 0 : i32
    return %c0_i32, %c0_i32_0 : i32, i32
  }
  func.func @transform_3(%arg0: i32, %arg1: i32) -> (i32, i32) {
    %c0_i32 = arith.constant 0 : i32
    %c0_i32_0 = arith.constant 0 : i32
    %c0_i32_1 = arith.constant 0 : i32
    return %c0_i32, %c0_i32_0 : i32, i32
  }
  func.func @transform_4(%arg0: i32, %arg1: i32) -> (i32, i32, i32) {
    %c0_i32 = arith.constant 0 : i32
    %c0_i32_0 = arith.constant 0 : i32
    %c0_i32_1 = arith.constant 0 : i32
    return %arg1, %c0_i32, %c0_i32_0 : i32, i32, i32
  }
  func.func @transform_5(%arg0: i32, %arg1: i32) -> (i32, i32, i32) {
    %c0_i32 = arith.constant 0 : i32
    %c0_i32_0 = arith.constant 0 : i32
    %c0_i32_1 = arith.constant 0 : i32
    return %arg1, %c0_i32, %c0_i32_0 : i32, i32, i32
  }
  func.func @transform_6(%arg0: i32, %arg1: i32) -> (i32, i32, i32) {
    %c0_i32 = arith.constant 0 : i32
    %c0_i32_0 = arith.constant 0 : i32
    %c0_i32_1 = arith.constant 0 : i32
    return %arg1, %c0_i32, %c0_i32_0 : i32, i32, i32
  }
  func.func @transform_7(%arg0: i32, %arg1: i32) -> (i32, i32, i32) {
    %c0_i32 = arith.constant 0 : i32
    %c0_i32_0 = arith.constant 0 : i32
    %c0_i32_1 = arith.constant 0 : i32
    return %arg1, %c0_i32, %c0_i32_0 : i32, i32, i32
  }
  func.func @transform_8(%arg0: i32, %arg1: i32) -> (i32, i32, i32) {
    %c0_i32 = arith.constant 0 : i32
    %c0_i32_0 = arith.constant 0 : i32
    %c0_i32_1 = arith.constant 0 : i32
    return %arg1, %c0_i32, %c0_i32_0 : i32, i32, i32
  }
  func.func @transform_9(%arg0: i32, %arg1: i32) -> (i32, i32, i32) {
    %c0_i32 = arith.constant 0 : i32
    %c0_i32_0 = arith.constant 0 : i32
    %c0_i32_1 = arith.constant 0 : i32
    return %arg1, %c0_i32, %c0_i32_0 : i32, i32, i32
  }
  func.func @transform_10(%arg0: i32, %arg1: i32) -> (i32, i32, i32) {
    %c0_i32 = arith.constant 0 : i32
    %c0_i32_0 = arith.constant 0 : i32
    %c0_i32_1 = arith.constant 0 : i32
    return %arg1, %c0_i32, %c0_i32_0 : i32, i32, i32
  }
  func.func @transform_11(%arg0: i32, %arg1: i32) -> (i32, i32, i32) {
    %c0_i32 = arith.constant 0 : i32
    %c0_i32_0 = arith.constant 0 : i32
    %c0_i32_1 = arith.constant 0 : i32
    return %arg1, %c0_i32, %c0_i32_0 : i32, i32, i32
  }
  func.func @transform_12(%arg0: i32, %arg1: i32) -> (i32, i32, i32) {
    %c0_i32 = arith.constant 0 : i32
    %c0_i32_0 = arith.constant 0 : i32
    %c0_i32_1 = arith.constant 0 : i32
    return %arg1, %c0_i32, %c0_i32_0 : i32, i32, i32
  }
  func.func @transform_13(%arg0: i32, %arg1: i32) -> (i32, i32, i32) {
    %c0_i32 = arith.constant 0 : i32
    %c0_i32_0 = arith.constant 0 : i32
    %c0_i32_1 = arith.constant 0 : i32
    return %arg1, %c0_i32, %c0_i32_0 : i32, i32, i32
  }
  func.func @transform_14(%arg0: i32, %arg1: i32) -> (i32, i32, i32) {
    %c0_i32 = arith.constant 0 : i32
    %c0_i32_0 = arith.constant 0 : i32
    %c0_i32_1 = arith.constant 0 : i32
    return %arg1, %c0_i32, %c0_i32_0 : i32, i32, i32
  }
  func.func @transform_15(%arg0: i32, %arg1: i32) -> (i32, i32, i32) {
    %c0_i32 = arith.constant 0 : i32
    %c0_i32_0 = arith.constant 0 : i32
    %c0_i32_1 = arith.constant 0 : i32
    return %arg1, %c0_i32, %c0_i32_0 : i32, i32, i32
  }
  func.func @transform_16(%arg0: i32, %arg1: i32) -> (i32, i32) {
    %c0_i32 = arith.constant 0 : i32
    %c0_i32_0 = arith.constant 0 : i32
    %c0_i32_1 = arith.constant 0 : i32
    return %c0_i32, %c0_i32_0 : i32, i32
  }
  func.func @transform_17(%arg0: i32, %arg1: i32) -> (i32, i32) {
    %c0_i32 = arith.constant 0 : i32
    %c0_i32_0 = arith.constant 0 : i32
    %c0_i32_1 = arith.constant 0 : i32
    return %c0_i32, %c0_i32_0 : i32, i32
  }
  func.func @transform_18(%arg0: i32, %arg1: i32) -> (i32, i32, i32) {
    %c0_i32 = arith.constant 0 : i32
    %c0_i32_0 = arith.constant 0 : i32
    %c0_i32_1 = arith.constant 0 : i32
    return %arg0, %c0_i32, %c0_i32_0 : i32, i32, i32
  }
  func.func @transform_19(%arg0: i32, %arg1: i32) -> (i32, i32, i32) {
    %c0_i32 = arith.constant 0 : i32
    %c0_i32_0 = arith.constant 0 : i32
    %c0_i32_1 = arith.constant 0 : i32
    return %arg0, %c0_i32, %c0_i32_0 : i32, i32, i32
  }
}

</mosaic_0001>

<bundles_post_ra>
// kernel: tpu_custom_call.1
= control target key start
LH: loop header
LB: loop body
LE: loop exit
PB: predicated region body
PF: predicated region fallthrough
CT: control target
= control target key end

     0   :  { %s4492_s0 = inlined_call_operand.hbm [shape: f32[2,8,128], index: 0, kind: input, shape index: {}]   ;;  %s4493_s1 = inlined_call_operand.vmem [shape: f32[2,1,8], index: 1, kind: input, shape index: {}]   ;;  %s4494_s2 = inlined_call_operand.hbm [shape: f32[1,128], index: 2, kind: input, shape index: {}]   ;;  %s4495_s3 = inlined_call_operand.hbm [shape: f32[1,128], index: 3, kind: input, shape index: {}]   ;;  %s4496_s4 = inlined_call_operand.hbm [shape: f32[2,128,768], index: 4, kind: input, shape index: {}]   ;;  %s4497_s5 = inlined_call_operand.vmem [shape: f32[2,1,768], index: 5, kind: input, shape index: {}]   ;;  %s4498_s6 = inlined_call_operand.hbm [shape: f32[2,256,128], index: 6, kind: input, shape index: {}]   ;;  %s4499_s7 = inlined_call_operand.vmem [shape: f32[2,1,128], index: 7, kind: input, shape index: {}]   ;;  %s4500_s8 = inlined_call_operand.vmem [shape: f32[2,1,128], index: 8, kind: input, shape index: {}]   ;;  %s4501_s9 = inlined_call_operand.vmem [shape: f32[2,1,128], index: 9, kind: input, shape index: {}]   ;;  %s4502_s10 = inlined_call_operand.hbm [shape: f32[2,128,128], index: 10, kind: input, shape index: {}]   ;;  %s4503_s11 = inlined_call_operand.vmem [shape: f32[2,1,128], index: 11, kind: input, shape index: {}]   ;;  %s4504_s12 = inlined_call_operand.hbm [shape: f32[2,128,128], index: 12, kind: input, shape index: {}]   ;;  %s4505_s13 = inlined_call_operand.vmem [shape: f32[2,1,128], index: 13, kind: input, shape index: {}]   ;;  %s4506_s14 = inlined_call_operand.vmem [shape: f32[2,1,128], index: 14, kind: input, shape index: {}]   ;;  %s4507_s15 = inlined_call_operand.vmem [shape: f32[2,1,128], index: 15, kind: input, shape index: {}]   ;;  %s4508_s16 = inlined_call_operand.hbm [shape: f32[128,128], index: 16, kind: input, shape index: {}]   ;;  %s4509_s17 = inlined_call_operand.vmem [shape: f32[1,128], index: 17, kind: input, shape index: {}]   ;;  %s4510_s18 = inlined_call_operand.hbm [shape: f32[2,8,128], index: 18, kind: output, shape index: {0}]   ;;  %s4511_s19 = inlined_call_operand.hbm [shape: f32[2,1,128], index: 19, kind: output, shape index: {1}]  }
   0x1   :  { %4563 = sst [smem:[#allocation47_spill]] %s4492_s0 }
   0x2   :  { %4564 = sst [smem:[#allocation48_spill]] %s4493_s1 }
   0x3   :  { %4565 = sst [smem:[#allocation49_spill]] %s4494_s2 }
   0x4   :  { %4566 = sst [smem:[#allocation50_spill]] %s4495_s3 }
   0x5   :  { %4567 = sst [smem:[#allocation51_spill]] %s4496_s4 }
   0x6   :  { %4568 = sst [smem:[#allocation52_spill]] %s4497_s5 }
   0x7   :  { %4569 = sst [smem:[#allocation53_spill]] %s4498_s6 }
   0x8   :  { %4570 = sst [smem:[#allocation54_spill]] %s4499_s7 }
   0x9   :  { %4571 = sst [smem:[#allocation55_spill]] %s4500_s8 }
   0xa   :  { %4572 = sst [smem:[#allocation56_spill]] %s4501_s9 }
   0xb   :  { %4573 = sst [smem:[#allocation57_spill]] %s4502_s10 }
   0xc   :  { %4574 = sst [smem:[#allocation58_spill]] %s4503_s11 }
   0xd   :  { %4575 = sst [smem:[#allocation59_spill]] %s4504_s12 }
   0xe   :  { %4576 = sst [smem:[#allocation60_spill]] %s4505_s13 }
   0xf   :  { %4577 = sst [smem:[#allocation61_spill]] %s4506_s14 }
  0x10   :  { %4578 = sst [smem:[#allocation62_spill]] %s4507_s15 }
  0x11   :  { %4579 = sst [smem:[#allocation63_spill]] %s4508_s16 }
  0x12   :  { %4580 = sst [smem:[#allocation64_spill]] %s4509_s17 }
  0x13   :  { %4581 = sst [smem:[#allocation65_spill]] %s4510_s18 }
  0x14   :  { %4582 = sst [smem:[#allocation66_spill]] %s4511_s19 }
  0x15   :  { %25 = vsyncpa [#allocation4], 0 }
  0x16   :  { %27 = vsyncpa [#allocation4 + $0x1], 0 }
  0x17   :  { %28 = vsyncpa [#allocation7], 0 }
  0x18   :  { %29 = vsyncpa [#allocation10], 0 }
  0x19   :  { %31 = vsyncpa [#allocation10 + $0x1], 0 }
  0x1a   :  { %32 = vsyncpa [#allocation13], 0 }
  0x1b   :  { %34 = vsyncpa [#allocation13 + $0x1], 0 }
  0x1c   :  { %35 = vsyncpa [#allocation16], 0 }
  0x1d   :  { %36 = vsyncpa [#allocation5], 0 }
  0x1e   :  { %38 = vsyncpa [#allocation5 + $0x1], 0 }
  0x1f   :  { %39 = vsyncpa [#allocation19], 0 }
  0x20   :  { %41 = vsyncpa [#allocation19 + $0x1], 0  ;;  %s3643_s0 = smov 0   ;;  %s3645_s30 = smov 0  }
  0x21   :  { %s3647_s20 = smov 0   ;;  %s3649_s21 = smov 0  }
  0x22   :  { %s3651_s1 = smov 0   ;;  %s3653_s22 = smov 0  }
  0x23   :  { %s3655_s2 = smov 0   ;;  %s3657_s23 = smov 0  }
  0x24   :  { %s3659_s24 = smov 0   ;;  %s3661_s25 = smov 0  }
  0x25   :  { %s3663_s3 = smov 0  }
  0x26 LB: > { %4583 = sst [smem:[#allocation27_spill]] %s3485_s30  ;;  %s3697_s26 = sadd.s32 4294967295, %s3521_s3   ;;  %s3521_s3 = sphi %s3663_s3, %s47_s3   ;;  %s3517_s25 = sphi %s3661_s25, %s4696_s25   ;;  %s3513_s24 = sphi %s3659_s24, %s4695_s24   ;;  %s3509_s23 = sphi %s3657_s23, %s4694_s23   ;;  %s3505_s2 = sphi %s3655_s2, %s4693_s2   ;;  %s3501_s22 = sphi %s3653_s22, %s4692_s22   ;;  %s3497_s1 = sphi %s3651_s1, %s4691_s1   ;;  %s3493_s21 = sphi %s3649_s21, %s4690_s21   ;;  %s3489_s20 = sphi %s3647_s20, %s4689_s20   ;;  %s3485_s30 = sphi %s3645_s30, %s4688_s30   ;;  %s3481_s0 = sphi %s3643_s0, %s4687_s0  }
  0x27   : > { %4584 = sst [smem:[#allocation28_spill]] %s3489_s20  ;;  %p173_p0 = scmp.ne.s32.totalorder %s3485_s30, %s3481_s0 }
  0x28   : > { %4585 = sst [smem:[#allocation29_spill]] %s3493_s21  ;;  %p4517_p1 = scmp.eq.s32.totalorder %s3697_s26, 0 }
  0x29   : > { %4586 = sst [smem:[#allocation30_spill]] %s3497_s1  ;;  %p2460_p2 = scmp.ge.s32.totalorder %s3521_s3, 1 }
  0x2a   : > { %4587 = sst [smem:[#allocation31_spill]] %s3501_s22  ;;  %p564_p3 = scmp.lt.s32.totalorder %s3521_s3, 5 }
  0x2b   : > { %4588 = sst [smem:[#allocation32_spill]] %s3505_s2  ;;  %p3705_p4 = por %p173_p0, %p4517_p1 }
  0x2c   : > { %4589 = sst [smem:[#allocation33_spill]] %s3509_s23  ;;  %p3709_p5 = pnand %p2460_p2, %p564_p3 }
  0x2d   : > { %4590 = sst [smem:[#allocation34_spill]] %s3513_s24  ;;  %s3523_s29 = smov [#allocation6]  }
  0x2e   : > { %4591 = sst [smem:[#allocation35_spill]] %s3517_s25  ;;  %s577_s19 = sshll.u32 %s3523_s29, 4  ;;  %s578_s19 = int_to_ptr.vmem [resolvable:$true] %s577_s19 }
  0x2f   : > { %4592 = sst [smem:[#allocation36_spill]] %s3521_s3  ;;  %p2957_p6 = pneg %p3709_p5 }
  0x30   : > { %s4593_s27 = scalar_select %p3705_p4, 1, 0 }
  0x31   : > { %s4595_s28 = scalar_select %p3709_p5, 1, 0 }
  0x32   : > { %4594 = sst [smem:[#allocation37_spill]] %s4593_s27  ;;  %p3717_p7 = pnand %p2957_p6, %p4517_p1 }
  0x33   : > { %4596 = sst [smem:[#allocation38_spill]] %s4595_s28  ;;  %s4598_s14 = sld [smem:[#allocation49_spill]] }
  0x34   : > { %s4597_s0 = scalar_select %p3717_p7, 1, 0 }
  0x35   : > { %p3733_p11 = pneg %p3717_p7 }
  0x37   : > { %s4599_s29 = scalar_select %p3733_p11, 1, 0 }
  0x39   : > { %s3117_s13 = scalar_lea.hbm %s4598_s14, 16 }
  0x3a   : > { %p3118_p10 = scmp.ne.s32.totalorder %s4598_s14, %s3117_s13  ;;  %p3124_p0 = scmp.lt.u32.totalorder %s3117_s13, %s4598_s14 }
  0x3c   : > { %p3120_p12 = pnand %p3733_p11, %p3118_p10 }
  0x3e   : > { %p3121_p13 = pneg %p3120_p12 }
  0x40   : > { %p3126_p2 = pnand %p3124_p0, %p3121_p13 }
  0x42   : > { %3129 = shalt.err (!%p3126_p2)
}
  0x43   : > { %s3130_s15 = scalar_lea.vmem %s578_s19, 16  ;;  %s3137_s5 = scalar_lea.vmem %s578_s19, 32 }
  0x44   : > { %p3131_p3 = scmp.ne.s32.totalorder %s578_s19, %s3130_s15  ;;  %p3138_p9 = scmp.lt.s32.totalorder %s578_s19, %s578_s19 }
  0x45   : > { %p3139_p8 = scmp.lt.s32.totalorder %s3137_s5, %s3130_s15 }
  0x46   : > { %p3133_p6 = pnand %p3131_p3, %p3733_p11 }
  0x47   : > { %p3140_p4 = por %p3139_p8, %p3138_p9 }
  0x48   : > { %p3134_p1 = pneg %p3133_p6 }
  0x4a   : > { %p3141_p5 = pnand %p3140_p4, %p3134_p1 }
  0x4c   : > { %3144 = shalt.err (!%p3141_p5)
}
  0x4d   : > { %2960 = dma.hbm_to_vmem [thread:$0]  (!%p3717_p7), %s4598_s14, 16, %s578_s19, [#allocation7]  }
  0x4e   : > { %p4600_p10 = scmp.eq.s32.totalorder %s3521_s3, 0  ;;  %p4601_p12 = scmp.ne.s32.totalorder %s3489_s20, %s3485_s30 }
  0x4f   : > { %p4524_p1 = scmp.lt.s32.totalorder %s3521_s3, 4  ;;  %s3757_s13 = sand.u32 1, %s3489_s20  }
  0x50   : > { %p169_p8 = por %p4601_p12, %p4600_p10  ;;  %s2927_s18 = smul.u32 768, %s3757_s13 }
  0x51   : > { %s2928_s15 = smul.u32 12288, %s3513_s24  ;;  %s4603_s4 = sld [smem:[#allocation51_spill]] }
  0x52   : > { %p3763_p4 = pnand %p4524_p1, %p169_p8  ;;  %s643_s9 = scalar_lea.vmem [#allocation9], %s2927_s18 }
  0x53   : > { %s650_s14 = sshll.u32 %s643_s9, 4  ;;  %s4604_s8 = sand.u32 1, %s3521_s3   ;;  %s3772_s14 = int_to_ptr.vmem [resolvable:$true] %s650_s14 }
  0x54   : > { %s4602_s5 = scalar_select %p3763_p4, 1, 0 }
  0x55   : > { %s3776_s7 = scalar_lea.sflag [#allocation10], %s4604_s8  ;;  %p3782_p9 = pneg %p3763_p4 }
  0x56   : > { %4605 = sst [smem:[#allocation39_spill]] %s3776_s7 }
  0x57   : > { %s3770_s19 = scalar_lea.hbm %s4603_s4, %s2928_s15  ;;  %s3150_s9 = scalar_lea.hbm %s4603_s4, 24576 }
  0x58   : > { %s3145_s2 = scalar_lea.hbm %s3770_s19, 12288  ;;  %p3151_p2 = scmp.lt.u32.totalorder %s3770_s19, %s4603_s4 }
  0x59   : > { %p3146_p5 = scmp.ne.s32.totalorder %s3770_s19, %s3145_s2  ;;  %p3152_p3 = scmp.lt.u32.totalorder %s3150_s9, %s3145_s2 }
  0x5a   : > { %s4606_s23 = scalar_select %p3782_p9, 1, 0 }
  0x5b   : > { %p3148_p13 = pnand %p3782_p9, %p3146_p5  ;;  %p3153_p6 = por %p3152_p3, %p3151_p2 }
  0x5c   : > { %p3154_p10 = scmp.lt.u32.totalorder %s3145_s2, %s3770_s19 }
  0x5d   : > { %p3149_p0 = pneg %p3148_p13 }
  0x5e   : > { %p3155_p12 = por %p3154_p10, %p3153_p6 }
  0x60   : > { %p3156_p8 = pnand %p3155_p12, %p3149_p0 }
  0x62   : > { %3159 = shalt.err (!%p3156_p8)
}
  0x63   : > { %s3160_s8 = scalar_lea.vmem %s3772_s14, 12288  ;;  %s3524_s15 = smov [#allocation9]  }
  0x64   : > { %p3161_p5 = scmp.ne.s32.totalorder %s3772_s14, %s3160_s8  ;;  %s3165_s11 = sshll.u32 %s3524_s15, 4  ;;  %s3166_s11 = int_to_ptr.vmem [resolvable:$false] %s3165_s11 }
  0x65   : > { %s3167_s18 = scalar_lea.vmem %s3166_s11, 24576  ;;  %p3168_p7 = scmp.lt.s32.totalorder %s3772_s14, %s3166_s11 }
  0x66   : > { %p3163_p13 = pnand %p3161_p5, %p3782_p9  ;;  %p3169_p11 = scmp.lt.s32.totalorder %s3167_s18, %s3160_s8 }
  0x68   : > { %p3164_p1 = pneg %p3163_p13  ;;  %p3170_p2 = por %p3169_p11, %p3168_p7 }
  0x6a   : > { %p3171_p3 = pnand %p3170_p2, %p3164_p1 }
  0x6c   : > { %3174 = shalt.err (!%p3171_p3)
}
  0x6d   : > { %s3525_s2 = smov 768   ;;  %s3526_s9 = smov 48  }
  0x6e   : > { %2973 = dma.hbm_to_vmem [thread:$0]  (!%p3763_p4), %s3770_s19, 12288, %s3772_s14, %s3776_s7, %s3525_s2, %s3525_s2, %s3526_s9  }
  0x6f   : > { %s4533_s17 = sshll.u32 %s3757_s13, 7  ;;  %s2506_s15 = sshll.u32 %s3513_s24, 11 }
  0x70   : > { %s4607_s10 = sld [smem:[#allocation57_spill]]  ;;  %s710_s4 = scalar_lea.vmem [#allocation12], %s4533_s17 }
  0x71   : > { %s717_s27 = sshll.u32 %s710_s4, 4  ;;  %s4608_s12 = sld [smem:[#allocation59_spill]]  ;;  %s3815_s27 = int_to_ptr.vmem [resolvable:$true] %s717_s27 }
  0x72   : > { %s4610_s19 = sand.u32 1, %s3521_s3  }
  0x73   : > { %s3824_s2 = scalar_lea.sflag [#allocation13], %s4610_s19 }
  0x76   : > { %s3811_s18 = scalar_lea.hbm %s4607_s10, %s2506_s15  ;;  %s3180_s17 = scalar_lea.hbm %s4607_s10, 4096 }
  0x77   : > { %s3820_s14 = scalar_lea.hbm %s4608_s12, %s2506_s15  ;;  %s3175_s9 = scalar_lea.hbm %s3811_s18, 2048 }
  0x78   : > { %4609 = sst [smem:[#allocation40_spill]] %s3820_s14  ;;  %p3176_p7 = scmp.ne.s32.totalorder %s3811_s18, %s3175_s9 }
  0x79   : > { %p3181_p0 = scmp.lt.u32.totalorder %s3811_s18, %s4607_s10  ;;  %p3182_p6 = scmp.lt.u32.totalorder %s3180_s17, %s3175_s9 }
  0x7a   : > { %p3178_p11 = pnand %p3176_p7, %p3782_p9  ;;  %p3184_p12 = scmp.lt.u32.totalorder %s3175_s9, %s3811_s18 }
  0x7b   : > { %p3183_p10 = por %p3182_p6, %p3181_p0 }
  0x7c   : > { %p3179_p1 = pneg %p3178_p11 }
  0x7d   : > { %p3185_p8 = por %p3184_p12, %p3183_p10 }
  0x7f   : > { %p3186_p5 = pnand %p3185_p8, %p3179_p1 }
  0x81   : > { %3189 = shalt.err (!%p3186_p5)
}
  0x82   : > { %s3190_s30 = scalar_lea.vmem %s3815_s27, 2048  ;;  %s3527_s28 = smov [#allocation12]  }
  0x83   : > { %p3191_p13 = scmp.ne.s32.totalorder %s3815_s27, %s3190_s30  ;;  %s3195_s15 = sshll.u32 %s3527_s28, 4  ;;  %s3196_s15 = int_to_ptr.vmem [resolvable:$false] %s3195_s15 }
  0x84   : > { %s3197_s7 = scalar_lea.vmem %s3196_s15, 4096  ;;  %p3198_p7 = scmp.lt.s32.totalorder %s3815_s27, %s3196_s15 }
  0x85   : > { %p3193_p2 = pnand %p3191_p13, %p3782_p9  ;;  %p3199_p11 = scmp.lt.s32.totalorder %s3197_s7, %s3190_s30 }
  0x87   : > { %p3194_p3 = pneg %p3193_p2  ;;  %p3200_p0 = por %p3199_p11, %p3198_p7 }
  0x89   : > { %p3201_p6 = pnand %p3200_p0, %p3194_p3 }
  0x8b   : > { %3204 = shalt.err (!%p3201_p6)
}
  0x8c   : > { %s4539_s17 = smov 128   ;;  %s4543_s19 = smov 8  }
  0x8d   : > { %2979 = dma.hbm_to_vmem [thread:$0]  (!%p3763_p4), %s3811_s18, 2048, %s3815_s27, %s3824_s2, %s4539_s17, %s4539_s17, %s4543_s19  }
  0x8e   : > { %s4611_s9 = sshll.u32 %s3757_s13, 7  ;;  %s3530_s4 = smov [#allocation8]  }
  0x8f   : > { %s737_s11 = scalar_lea.vmem [#allocation14], %s4611_s9  ;;  %s588_s30 = sshll.u32 %s3530_s4, 4  ;;  %s589_s30 = int_to_ptr.vmem [resolvable:$true] %s588_s30 }
  0x90   : > { %s744_s8 = sshll.u32 %s737_s11, 4  ;;  %s4612_s7 = sld [smem:[#allocation50_spill]]  ;;  %s3853_s8 = int_to_ptr.vmem [resolvable:$true] %s744_s8 }
  0x91   : > { %p4613_p10 = scmp.ne.s32.totalorder %s4599_s29, 0 }
  0x96   : > { %s3205_s10 = scalar_lea.hbm %s4612_s7, 16 }
  0x97   : > { %p3206_p1 = scmp.ne.s32.totalorder %s4612_s7, %s3205_s10  ;;  %p3212_p5 = scmp.lt.u32.totalorder %s3205_s10, %s4612_s7 }
  0x99   : > { %p3208_p12 = pnand %p3206_p1, %p4613_p10 }
  0x9b   : > { %p3209_p8 = pneg %p3208_p12 }
  0x9d   : > { %p3214_p13 = pnand %p3212_p5, %p3209_p8 }
  0x9f   : > { %3217 = shalt.err (!%p3214_p13)
}
  0xa0   : > { %s3218_s9 = scalar_lea.vmem %s589_s30, 16  ;;  %s3225_s11 = scalar_lea.vmem %s589_s30, 32 }
  0xa1   : > { %p3219_p2 = scmp.ne.s32.totalorder %s589_s30, %s3218_s9  ;;  %p3226_p11 = scmp.lt.s32.totalorder %s589_s30, %s589_s30 }
  0xa2   : > { %p3227_p0 = scmp.lt.s32.totalorder %s3225_s11, %s3218_s9 }
  0xa3   : > { %p3221_p3 = pnand %p3219_p2, %p4613_p10 }
  0xa4   : > { %p3228_p6 = por %p3227_p0, %p3226_p11 }
  0xa5   : > { %p3222_p7 = pneg %p3221_p3 }
  0xa7   : > { %p3229_p4 = pnand %p3228_p6, %p3222_p7 }
  0xa9   : > { %3232 = shalt.err (!%p3229_p4)
}
  0xaa   : > { %p4614_p1 = scmp.ne.s32.totalorder %s4597_s0, 0  ;;  %s3531_s10 = smov [#allocation15]  }
  0xab   : > { %s598_s4 = sshll.u32 %s3531_s10, 4  ;;  %s4615_s16 = sld [smem:[#allocation63_spill]]  ;;  %s599_s4 = int_to_ptr.vmem [resolvable:$true] %s598_s4 }
  0xac   : > { %2963 = dma.hbm_to_vmem [thread:$0]  (!%p4614_p1), %s4612_s7, 16, %s589_s30, [#allocation7]  }
  0xb1   : > { %s3233_s27 = scalar_lea.hbm %s4615_s16, 2048 }
  0xb2   : > { %p3234_p12 = scmp.ne.s32.totalorder %s4615_s16, %s3233_s27  ;;  %p3240_p5 = scmp.lt.u32.totalorder %s3233_s27, %s4615_s16 }
  0xb4   : > { %p3236_p4 = pnand %p3234_p12, %p4613_p10 }
  0xb6   : > { %p3237_p8 = pneg %p3236_p4 }
  0xb8   : > { %p3242_p13 = pnand %p3240_p5, %p3237_p8 }
  0xba   : > { %3245 = shalt.err (!%p3242_p13)
}
  0xbb   : > { %s3246_s30 = scalar_lea.vmem %s599_s4, 2048  ;;  %p3254_p11 = scmp.lt.s32.totalorder %s599_s4, %s599_s4 }
  0xbc   : > { %p3247_p2 = scmp.ne.s32.totalorder %s599_s4, %s3246_s30  ;;  %p3255_p0 = scmp.lt.s32.totalorder %s3246_s30, %s3246_s30 }
  0xbe   : > { %p3249_p3 = pnand %p3247_p2, %p4613_p10  ;;  %p3256_p6 = por %p3255_p0, %p3254_p11 }
  0xc0   : > { %p3250_p7 = pneg %p3249_p3 }
  0xc2   : > { %p3257_p9 = pnand %p3256_p6, %p3250_p7 }
  0xc4   : > { %3260 = shalt.err (!%p3257_p9)
}
  0xc5   : > { %s4616_s17 = smov 128   ;;  %s2459_s0 = sadd.s32 4294967294, %s3521_s3  }
  0xc6   : > { %2966 = dma.hbm_to_vmem [thread:$0]  (!%p4614_p1), %s4615_s16, 2048, %s599_s4, [#allocation16], %s4616_s17, %s4616_s17, %s4543_s19  }
  0xc7   : > { %s56_s29 = sadd.s32 1, %s3513_s24  ;;  %s59_s10 = sadd.s32 1, %s3517_s25 }
  0xc8   : > { %p57_p9 = scmp.ge.s32.totalorder %s56_s29, 2  ;;  %s66_s28 = sadd.s32 1, %s3501_s22 }
  0xc9   : > { %p73_p10 = scmp.ne.s32.totalorder %s3501_s22, %s3497_s1  ;;  %p4618_p1 = scmp.eq.s32.totalorder %s3521_s3, 0 }
  0xca   : > { %s4698_s29 = smov (%p57_p9, %s56_s29), 0  ;;  %s4700_s10 = smov (!%p57_p9, %s59_s10), %s3517_s25 }
  0xcb   : > { %4617 = sst [smem:[#allocation41_spill]] %s4698_s29  ;;  %p3908_p12 = por %p4618_p1, %p73_p10 }
  0xcc   : > { %p79_p4 = scmp.ne.s32.totalorder %s3497_s1, %s3493_s21  ;;  %p61_p8 = scmp.ge.s32.totalorder %s4700_s10, 2 }
  0xcd   : > { %s157_s15 = ssub.s32 %s3513_s24, %s4698_s29  ;;  %p4620_p5 = scmp.eq.s32.totalorder %s3697_s26, 0 }
  0xce   : > { %p158_p2 = scmp.eq.s32.totalorder %s157_s15, 0  ;;  %s4702_s10 = smov (%p61_p8, %s4700_s10), 0 }
  0xcf   : > { %p3921_p13 = por %p4620_p5, %p79_p4  ;;  %4622 = sst [smem:[#allocation42_spill]] %s4702_s10 }
  0xd0   : > { %s4623_s18 = sadd.s32 1, %s3489_s20  ;;  %s63_s11 = ssub.s32 %s3517_s25, %s4702_s10 }
  0xd1   : > { %s4621_s27 = scalar_select %p3921_p13, 1, 0 }
  0xd2   : > { %s3930_s9 = scalar_select %p158_p2, %s3489_s20, %s4623_s18  }
  0xd3   : > { %p525_p3 = scmp.eq.s32.totalorder %s3697_s26, 3  ;;  %p64_p7 = scmp.eq.s32.totalorder %s63_s11, 0 }
  0xd4   : > { %4624 = sst [smem:[#allocation43_spill]] %s3930_s9  ;;  %p531_p11 = scmp.eq.s32.totalorder %s2459_s0, 3 }
  0xd5   : > { %p3938_p0 = por %p525_p3, %p73_p10  ;;  %s615_s12 = sand.u32 1, %s3501_s22  }
  0xd6   : > { %s3944_s14 = scalar_select %p64_p7, %s3501_s22, %s66_s28  }
  0xd7   : > { %s4625_s30 = scalar_select %p3938_p0, 1, 0 }
  0xd8   : > { %4627 = sst [smem:[#allocation45_spill]] %s3944_s14  ;;  %p3949_p6 = por %p531_p11, %p79_p4 }
  0xd9   : > { %4626 = sst [smem:[#allocation44_spill]] %s4625_s30  ;;  %s2465_s18 = sshll.u32 %s615_s12, 3 }
  0xda   : > { %s4628_s15 = scalar_select %p3949_p6, 1, 0 }
  0xdb   : > { %s2466_s19 = sshll.u32 %s3517_s25, 7  ;;  %s4630_s10 = sld [smem:[#allocation47_spill]] }
  0xdc   : > { %4629 = sst [smem:[#allocation46_spill]] %s4628_s15  ;;  %s619_s0 = scalar_lea.vmem [#allocation3], %s2465_s18 }
  0xdd   : > { %s626_s29 = sshll.u32 %s619_s0, 4  ;;  %p4631_p9 = scmp.lt.s32.totalorder %s3521_s3, 4  ;;  %s3967_s29 = int_to_ptr.vmem [resolvable:$true] %s626_s29 }
  0xde   : > { %s2468_s25 = sshll.u32 %s3757_s13, 8  ;;  %s616_s16 = scalar_lea.sflag [#allocation4], %s615_s12 }
  0xdf   : > { %p3963_p10 = pnand %p4631_p9, %p3908_p12 }
  0xe1   : > { %s3957_s11 = scalar_lea.hbm %s4630_s10, %s2466_s19  ;;  %p3263_p4 = pneg %p3963_p10 }
  0xe2   : > { %s3261_s19 = scalar_lea.hbm %s3957_s11, 128  ;;  %s3266_s18 = scalar_lea.hbm %s4630_s10, 256 }
  0xe3   : > { %p3262_p1 = scmp.ne.s32.totalorder %s3957_s11, %s3261_s19  ;;  %p3267_p12 = scmp.lt.u32.totalorder %s3957_s11, %s4630_s10 }
  0xe4   : > { %p3268_p2 = scmp.lt.u32.totalorder %s3266_s18, %s3261_s19  ;;  %p3270_p7 = scmp.lt.u32.totalorder %s3261_s19, %s3957_s11 }
  0xe5   : > { %p3264_p8 = pnand %p3263_p4, %p3262_p1 }
  0xe6   : > { %p3269_p3 = por %p3268_p2, %p3267_p12 }
  0xe7   : > { %p3265_p5 = pneg %p3264_p8 }
  0xe8   : > { %p3271_p11 = por %p3270_p7, %p3269_p3 }
  0xea   : > { %p3272_p9 = pnand %p3271_p11, %p3265_p5 }
  0xec   : > { %3275 = shalt.err (!%p3272_p9)
}
  0xed   : > { %s3276_s12 = scalar_lea.vmem %s3967_s29, 128  ;;  %s3532_s7 = smov [#allocation3]  }
  0xee   : > { %p3277_p1 = scmp.ne.s32.totalorder %s3967_s29, %s3276_s12  ;;  %s3281_s4 = sshll.u32 %s3532_s7, 4  ;;  %s3282_s4 = int_to_ptr.vmem [resolvable:$false] %s3281_s4 }
  0xef   : > { %s3283_s14 = scalar_lea.vmem %s3282_s4, 256  ;;  %p3284_p0 = scmp.lt.s32.totalorder %s3967_s29, %s3282_s4 }
  0xf0   : > { %p3279_p8 = pnand %p3277_p1, %p3263_p4  ;;  %p3285_p12 = scmp.lt.s32.totalorder %s3283_s14, %s3276_s12 }
  0xf2   : > { %p3280_p6 = pneg %p3279_p8  ;;  %p3286_p2 = por %p3285_p12, %p3284_p0 }
  0xf4   : > { %p3287_p3 = pnand %p3286_p2, %p3280_p6 }
  0xf6   : > { %3290 = shalt.err (!%p3287_p3)
}
  0xf7   : > { %2970 = dma.hbm_to_vmem [thread:$0]  (!%p3963_p10), %s3957_s11, 128, %s3967_s29, %s616_s16  }
  0xf8   : > { %s2505_s19 = sshll.u32 %s3513_s24, 12  ;;  %s671_s18 = scalar_lea.vmem [#allocation11], %s2468_s25 }
  0xf9   : > { %s678_s0 = sshll.u32 %s671_s18, 4  ;;  %s4633_s6 = sld [smem:[#allocation53_spill]]  ;;  %s4003_s0 = int_to_ptr.vmem [resolvable:$true] %s678_s0 }
  0xfa   : > { %p4634_p6 = scmp.ne.s32.totalorder %s4606_s23, 0 }
  0xff   : > { %s4001_s4 = scalar_lea.hbm %s4633_s6, %s2505_s19  ;;  %s3296_s25 = scalar_lea.hbm %s4633_s6, 8192 }
 0x100   : > { %s3291_s28 = scalar_lea.hbm %s4001_s4, 4096  ;;  %p3297_p5 = scmp.lt.u32.totalorder %s4001_s4, %s4633_s6 }
 0x101   : > { %p3292_p0 = scmp.ne.s32.totalorder %s4001_s4, %s3291_s28  ;;  %p3298_p7 = scmp.lt.u32.totalorder %s3296_s25, %s3291_s28 }
 0x102   : > { %p3300_p9 = scmp.lt.u32.totalorder %s3291_s28, %s4001_s4 }
 0x103   : > { %p3294_p4 = pnand %p3292_p0, %p4634_p6  ;;  %p3299_p11 = por %p3298_p7, %p3297_p5 }
 0x105   : > { %p3295_p10 = pneg %p3294_p4  ;;  %p3301_p1 = por %p3300_p9, %p3299_p11 }
 0x107   : > { %p3302_p8 = pnand %p3301_p1, %p3295_p10 }
 0x109   : > { %3305 = shalt.err (!%p3302_p8)
}
 0x10a   : > { %s3306_s10 = scalar_lea.vmem %s4003_s0, 4096  ;;  %s3533_s12 = smov [#allocation11]  }
 0x10b   : > { %p3307_p12 = scmp.ne.s32.totalorder %s4003_s0, %s3306_s10  ;;  %s3311_s14 = sshll.u32 %s3533_s12, 4  ;;  %s3312_s14 = int_to_ptr.vmem [resolvable:$false] %s3311_s14 }
 0x10c   : > { %s3313_s19 = scalar_lea.vmem %s3312_s14, 8192  ;;  %p3314_p0 = scmp.lt.s32.totalorder %s4003_s0, %s3312_s14 }
 0x10d   : > { %p3309_p2 = pnand %p3307_p12, %p4634_p6  ;;  %p3315_p4 = scmp.lt.s32.totalorder %s3313_s19, %s3306_s10 }
 0x10f   : > { %p3310_p3 = pneg %p3309_p2  ;;  %p3316_p5 = por %p3315_p4, %p3314_p0 }
 0x111   : > { %p3317_p7 = pnand %p3316_p5, %p3310_p3 }
 0x113   : > { %3320 = shalt.err (!%p3317_p7)
}
 0x114   : > { %p4635_p10 = scmp.ne.s32.totalorder %s4602_s5, 0  ;;  %s4636_s18 = smov 8  }
 0x115   : > { %s4637_s7 = sld [smem:[#allocation39_spill]]  ;;  %s4638_s28 = sld [smem:[#allocation40_spill]] }
 0x116   : > { %s4639_s11 = sld [smem:[#allocation59_spill]] }
 0x11b   : > { %2976 = dma.hbm_to_vmem [thread:$0]  (!%p4635_p10), %s4001_s4, 4096, %s4003_s0, %s4637_s7, %s4616_s17, %s4616_s17, %s4636_s18  }
 0x11c   : > { %s3321_s29 = scalar_lea.hbm %s4638_s28, 2048  ;;  %s3326_s16 = scalar_lea.hbm %s4639_s11, 4096 }
 0x11d   : > { %p3322_p11 = scmp.ne.s32.totalorder %s4638_s28, %s3321_s29  ;;  %p3327_p8 = scmp.lt.u32.totalorder %s4638_s28, %s4639_s11 }
 0x11e   : > { %p3328_p12 = scmp.lt.u32.totalorder %s3326_s16, %s3321_s29  ;;  %p3330_p3 = scmp.lt.u32.totalorder %s3321_s29, %s4638_s28 }
 0x11f   : > { %p3324_p9 = pnand %p3322_p11, %p4634_p6 }
 0x120   : > { %p3329_p2 = por %p3328_p12, %p3327_p8 }
 0x121   : > { %p3325_p1 = pneg %p3324_p9 }
 0x122   : > { %p3331_p0 = por %p3330_p3, %p3329_p2 }
 0x124   : > { %p3332_p4 = pnand %p3331_p0, %p3325_p1 }
 0x126   : > { %3335 = shalt.err (!%p3332_p4)
}
 0x127   : > { %s3336_s0 = scalar_lea.vmem %s3853_s8, 2048  ;;  %s3534_s4 = smov [#allocation14]  }
 0x128   : > { %p3337_p5 = scmp.ne.s32.totalorder %s3853_s8, %s3336_s0  ;;  %s3341_s14 = sshll.u32 %s3534_s4, 4  ;;  %s3342_s14 = int_to_ptr.vmem [resolvable:$false] %s3341_s14 }
 0x129   : > { %s3343_s19 = scalar_lea.vmem %s3342_s14, 4096  ;;  %p3344_p9 = scmp.lt.s32.totalorder %s3853_s8, %s3342_s14 }
 0x12a   : > { %p3339_p7 = pnand %p3337_p5, %p4634_p6  ;;  %p3345_p13 = scmp.lt.s32.totalorder %s3343_s19, %s3336_s0 }
 0x12c   : > { %p3340_p11 = pneg %p3339_p7  ;;  %p3346_p8 = por %p3345_p13, %p3344_p9 }
 0x12e   : > { %p3347_p12 = pnand %p3346_p8, %p3340_p11 }
 0x130   : > { %3350 = shalt.err (!%p3347_p12)
}
 0x131   : > { %2982 = dma.hbm_to_vmem [thread:$0]  (!%p4635_p10), %s4638_s28, 2048, %s3853_s8, %s3824_s2, %s4616_s17, %s4616_s17, %s4636_s18  }
 0x132   : > { %s4640_s23 = sld [smem:[#allocation38_spill]] }
 0x138   : > { %p4641_p6 = scmp.ne.s32.totalorder %s4640_s23, 0 }
 0x139   : > { %s4058_s7 = sand.u32 (!%p4641_p6), 1, %s3497_s1   ;;  %p4642_p13 = scmp.ne.s32.totalorder (!%p4641_p6), %s4621_s27, 0 }
 0x13a   : > { %774 = sbr.rel (%p4641_p6) target bundleno = 2810 (0xafa), region = 92  ;;  %s4552_s29 = sshll.u32 (!%p4641_p6), %s4058_s7, 3 }
 0x13b   : > { %s777_s13 = scalar_lea.sflag (!%p4641_p6), [#allocation4], %s4058_s7  ;;  %s4064_s5 = scalar_lea.vmem (!%p4641_p6), [#allocation3], %s4552_s29 }
 0x141   : > { %3452 = dma.done.wait (%p4642_p13), %s777_s13, 128  }
 0x142   : > { %3454 = vsyncadd (%p4642_p13), %s777_s13, 4294967168  ;;  %p4643_p10 = scmp.eq.s32.totalorder %s3697_s26, 0 }
 0x144   : > { %3456 = dma.done.wait (%p4643_p10), [#allocation7], 32   ;;  %p4644_p1 = pmov %p4643_p10 }
 0x145   : > { %s4645_s2 = sld [smem:[#allocation27_spill]]  ;;  %s4646_s8 = sld [smem:[#allocation37_spill]] }
 0x146   : > { %3458 = vsyncadd (%p4644_p1), [#allocation7], 4294967264  ;;  %s793_s17 = sand.u32 1, %s3697_s26  }
 0x147   : > { %s794_s25 = scalar_lea.sflag [#allocation10], %s793_s17 }
 0x14b   : > { %s795_s18 = sand.u32 1, %s4645_s2   ;;  %p4647_p2 = scmp.ne.s32.totalorder %s4646_s8, 0 }
 0x14c   : > { %s2929_s28 = smul.u32 768, %s795_s18 }
 0x14e   : > { %s4076_s11 = scalar_lea.vmem [#allocation9], %s2929_s28 }
 0x14f   : > { %3460 = dma.done.wait (%p4647_p2), %s794_s25, 16384  }
 0x150   : > { %3462 = vsyncadd (%p4647_p2), %s794_s25, 4294950912  ;;  %s2481_s27 = sshll.u32 %s795_s18, 8  ;;  %s2482_s16 = sshll.u32 %s795_s18, 7 }
 0x151   : > { %s4082_s10 = scalar_lea.vmem [#allocation11], %s2481_s27  ;;  %s812_s12 = scalar_lea.sflag [#allocation13], %s793_s17 }
 0x152   : > { %s4084_s0 = scalar_lea.vmem [#allocation12], %s2482_s16 }
 0x153   : > { %3464 = dma.done.wait (%p4647_p2), %s812_s12, 4096  }
 0x154   : > { %3466 = vsyncadd (%p4647_p2), %s812_s12, 4294963200  ;;  %s4090_s4 = scalar_lea.vmem [#allocation14], %s2482_s16  ;;  %p4648_p3 = pmov %p4644_p1 }
 0x155   : > { %p4649_p0 = pmov %p4644_p1 }
 0x156   : > { %3468 = dma.done.wait (%p4648_p3), [#allocation16], 2048  }
 0x157   : > { %3470 = vsyncadd (%p4649_p0), [#allocation16], 4294965248  ;;  %s4650_s14 = sld [smem:[#allocation33_spill]]  ;;  %s4651_s19 = sld [smem:[#allocation32_spill]] }
 0x158   : > { %s4656_s20 = sld [smem:[#allocation52_spill]]  ;;  %s4657_s26 = sld [smem:[#allocation58_spill]] }
 0x159   : > { %s4658_s28 = sld [smem:[#allocation60_spill]]  ;;  %s4659_s29 = sld [smem:[#allocation61_spill]] }
 0x15a   : > { %s4660_s13 = sld [smem:[#allocation62_spill]]  ;;  %s4661_s22 = sshll.u32 %s4058_s7, 3 }
 0x15b   : > { %s4144_s1 = scalar_lea.vmem [#allocation17], %s4661_s22 }
 0x15d   : > { %p935_p4 = scmp.lt.s32.totalorder %s4650_s14, 1  ;;  %p938_p5 = scmp.lt.s32.totalorder %s4651_s19, 1 }
 0x15e   : > { %p2486_p7 = scmp.ne.s32.totalorder %s4651_s19, 0 }
 0x15f   : > { %s4704_s14 = smov (!%p935_p4, %s4650_s14), 1  ;;  %v967_v0 = vld [vmem:[%s4064_s5] sm:$0xff] (!%p2486_p7)  ;;  %v2487_v11 = vld [vmem:[#allocation6] ss:$0 sm:$0xff] (!%p2486_p7)  ;;  %v2488_v13 = vld [vmem:[#allocation8] ss:$0 sm:$0xff] (!%p2486_p7) }
 0x160   : > { %s4102_s23 = scalar_select %p938_p5, %s4651_s19, 1 }
 0x161   : > { %966 = sbr.rel (%p2486_p7) target bundleno = 523 (0x20b), region = 128  ;;  %970 = vadd.xlane.f32.xlu0 (!%p2486_p7), %v967_v0  ;;  %v973_v1 = vmul.f32 (!%p2486_p7), %v967_v0, %v967_v0 }
 0x162   : > { %s2930_s17 = smul.u32 6, %s4102_s23  ;;  %s953_s3 = scalar_lea.vmem %s4657_s26, %s4102_s23 }
 0x163   : > { %s956_s25 = scalar_lea.vmem %s4658_s28, %s4102_s23  ;;  %s959_s12 = scalar_lea.vmem %s4659_s29, %s4102_s23 }
 0x164   : > { %s4124_s15 = scalar_lea.vmem %s4656_s20, %s2930_s17  ;;  %s962_s2 = scalar_lea.vmem %s4660_s13, %s4102_s23 }
 0x165   : > { %s934_s20 = scalar_lea.vmem [#allocation18], %s4058_s7  ;;  %974 = vadd.xlane.f32.xlu0 (!%p2486_p7), %v973_v1 }
 0x1ee   : > { %v971_v2 = vpop.xlane.xlu0 %970 }
 0x1ef   : > { %v972_v3 = vmul.f32 0.03125, %v971_v2 }
 0x1f1   : > { %v977_v5 = vmul.f32 %v972_v3, %v972_v3  ;;  %v979_v9 = vsub.f32 %v967_v0, %v972_v3 }
 0x1f2   : > { %v975_v4 = vpop.xlane.xlu0 %974 }
 0x1f3   : > { %v976_v6 = vmul.f32 0.03125, %v975_v4 }
 0x1f5   : > { %v978_v7 = vsub.f32 %v976_v6, %v977_v5 }
 0x1f7   : > { %v980_v8 = vadd.f32 1e-12, %v978_v7 }
 0x1f9   : > { %3099 = vrsqrt.f32 %v980_v8 }
 0x203   : > { %v3100_v10 = vpop.eup %3099 }
 0x204   : > { %v982_v12 = vmul.f32 %v3100_v10, %v979_v9 }
 0x206   : > { %v989_v14 = vmul.f32 %v2487_v11, %v982_v12 }
 0x208   : > { %v996_v15 = vadd.f32 %v2488_v13, %v989_v14 }
 0x20a   : > { %997 = vst [vmem:[#allocation2] sm:$0xff] %v996_v15 }
 0x20b PF: > { %v1002_v16 = vld [vmem:[%s4076_s11 + $0x18] sm:$0xff]  ;;  %v1008_v17 = vld [vmem:[%s4076_s11 + $0x48] sm:$0xff]  ;;  %v1001_v18 = vld [vmem:[%s4076_s11 + $0x10] sm:$0xff]  ;;  %v3535_v23 = vmov 0.0   ;;  %vm3536_vm0 = vmmov 0   ;;  %s4662_s22 = sld [smem:[#allocation48_spill]] }
 0x20c   : > { %v2759_v19 = vpack.c.bf16 %v1008_v17, %v1002_v16  ;;  %v1007_v20 = vld [vmem:[%s4076_s11 + $0x40] sm:$0xff]  ;;  %v1000_v21 = vld [vmem:[%s4076_s11 + $0x8] sm:$0xff]  ;;  %v1006_v22 = vld [vmem:[%s4076_s11 + $0x38] sm:$0xff]  ;;  %1262 = vmatprep.mubr.f32.mxu1 %v3535_v23  ;;  %1191 = vmatprep.mubr.f32.mxu0 %v3535_v23  ;;  %vm1419_vm1 = vcmask 64512   ;;  %s4664_s5 = sld [smem:[#allocation54_spill]]  ;;  %s4668_s27 = sld [smem:[#allocation56_spill]] }
 0x20d   : > { %v2761_v24 = vpack.c.bf16 %v1007_v20, %v1001_v18  ;;  %v2727_v25 = vpack.c.bf16 %v1006_v22, %v1000_v21  ;;  %v999_v26 = vld [vmem:[%s4076_s11] sm:$0xff]  ;;  %v1005_v27 = vld [vmem:[%s4076_s11 + $0x30] sm:$0xff]  ;;  %v1014_v28 = vld [vmem:[%s4076_s11 + $0x78] sm:$0xff] }
 0x20e   : > { %2760 = vmatprep.subr.bf16.mxu1 %v2759_v19  ;;  %v2729_v29 = vpack.c.bf16 %v1005_v27, %v999_v26  ;;  %v1020_v30 = vld [vmem:[%s4076_s11 + $0xa8] sm:$0xff]  ;;  %v1013_v31 = vld [vmem:[%s4076_s11 + $0x70] sm:$0xff]  ;;  %v1019_v32 = vld [vmem:[%s4076_s11 + $0xa0] sm:$0xff] }
 0x20f   : > { %2762 = vmatpush1.bf16.msra.mxu1 %v2761_v24  ;;  %2728 = vmatprep.subr.bf16.mxu0 %v2727_v25  ;;  %v2763_v33 = vpack.c.bf16 %v1020_v30, %v1014_v28  ;;  %v2765_v34 = vpack.c.bf16 %v1019_v32, %v1013_v31  ;;  %v1012_v35 = vld [vmem:[%s4076_s11 + $0x68] sm:$0xff]  ;;  %v1018_v36 = vld [vmem:[%s4076_s11 + $0x98] sm:$0xff]  ;;  %v1011_v37 = vld [vmem:[%s4076_s11 + $0x60] sm:$0xff] }
 0x210   : > { %2730 = vmatpush1.bf16.msra.mxu0 %v2729_v29  ;;  %v2731_v38 = vpack.c.bf16 %v1018_v36, %v1012_v35  ;;  %v1017_v39 = vld [vmem:[%s4076_s11 + $0x90] sm:$0xff]  ;;  %v1026_v40 = vld [vmem:[%s4076_s11 + $0xd8] sm:$0xff]  ;;  %v1032_v41 = vld [vmem:[%s4076_s11 + $0x108] sm:$0xff] }
 0x211   : > { %2764 = vmatprep.subr.bf16.mxu1 %v2763_v33  ;;  %v2733_v42 = vpack.c.bf16 %v1017_v39, %v1011_v37  ;;  %v2767_v43 = vpack.c.bf16 %v1032_v41, %v1026_v40  ;;  %v1025_v44 = vld [vmem:[%s4076_s11 + $0xd0] sm:$0xff]  ;;  %v1031_v45 = vld [vmem:[%s4076_s11 + $0x100] sm:$0xff]  ;;  %v1024_v46 = vld [vmem:[%s4076_s11 + $0xc8] sm:$0xff]  ;;  %s4663_s9 = scalar_lea.vmem %s4662_s22, %s4704_s14  ;;  %s4666_s14 = sld [smem:[#allocation55_spill]] }
 0x212   : > { %2732 = vmatprep.subr.bf16.mxu0 %v2731_v38  ;;  %v1030_v47 = vld [vmem:[%s4076_s11 + $0xf8] sm:$0xff]  ;;  %v1023_v48 = vld [vmem:[%s4076_s11 + $0xc0] sm:$0xff]  ;;  %v1029_v49 = vld [vmem:[%s4076_s11 + $0xf0] sm:$0xff]  ;;  %v2769_v50 = vpack.c.bf16 %v1031_v45, %v1025_v44  ;;  %s4669_s8 = scalar_lea.vmem %s4668_s27, %s4102_s23 }
 0x213   : > { %2766 = vmatpush1.bf16.msra.mxu1 %v2765_v34  ;;  %v2735_v51 = vpack.c.bf16 %v1030_v47, %v1024_v46  ;;  %v1038_v52 = vld [vmem:[%s4076_s11 + $0x138] sm:$0xff]  ;;  %v1044_v53 = vld [vmem:[%s4076_s11 + $0x168] sm:$0xff]  ;;  %v1037_v54 = vld [vmem:[%s4076_s11 + $0x130] sm:$0xff]  ;;  %v2737_v55 = vpack.c.bf16 %v1029_v49, %v1023_v48 }
 0x214   : > { %2734 = vmatpush1.bf16.msra.mxu0 %v2733_v42  ;;  %2768 = vmatprep.subr.bf16.mxu1 %v2767_v43  ;;  %v2771_v56 = vpack.c.bf16 %v1044_v53, %v1038_v52  ;;  %v1043_v57 = vld [vmem:[%s4076_s11 + $0x160] sm:$0xff]  ;;  %v1036_v58 = vld [vmem:[%s4076_s11 + $0x128] sm:$0xff]  ;;  %v1042_v59 = vld [vmem:[%s4076_s11 + $0x158] sm:$0xff] }
 0x215   : > { %2736 = vmatprep.subr.bf16.mxu0 %v2735_v51  ;;  %v2739_v60 = vpack.c.bf16 %v1042_v59, %v1036_v58  ;;  %v1035_v61 = vld [vmem:[%s4076_s11 + $0x120] sm:$0xff]  ;;  %v1041_v62 = vld [vmem:[%s4076_s11 + $0x150] sm:$0xff]  ;;  %v1050_v63 = vld [vmem:[%s4076_s11 + $0x198] sm:$0xff]  ;;  %v2773_v1 = vpack.c.bf16 %v1043_v57, %v1037_v54 }
 0x216   : > { %v1056_v0 = vld [vmem:[%s4076_s11 + $0x1c8] sm:$0xff]  ;;  %v1054_v3 = vld [vmem:[%s4076_s11 + $0x1b8] sm:$0xff]  ;;  %v2741_v4 = vpack.c.bf16 %v1041_v62, %v1035_v61  ;;  %v1049_v6 = vld [vmem:[%s4076_s11 + $0x190] sm:$0xff] }
 0x217   : > { %2770 = vmatpush1.bf16.msra.mxu1 %v2769_v50  ;;  %v1048_v2 = vld [vmem:[%s4076_s11 + $0x188] sm:$0xff]  ;;  %v2775_v5 = vpack.c.bf16 %v1056_v0, %v1050_v63  ;;  %v1055_v7 = vld [vmem:[%s4076_s11 + $0x1c0] sm:$0xff]  ;;  %v1053_v10 = vld [vmem:[%s4076_s11 + $0x1b0] sm:$0xff]  ;;  %s4667_s19 = scalar_lea.vmem %s4666_s14, %s4102_s23 }
 0x218   : > { %2738 = vmatpush1.bf16.msra.mxu0 %v2737_v55  ;;  %2772 = vmatprep.subr.bf16.mxu1 %v2771_v56  ;;  %v1047_v8 = vld [vmem:[%s4076_s11 + $0x180] sm:$0xff]  ;;  %v2743_v9 = vpack.c.bf16 %v1054_v3, %v1048_v2  ;;  %v1062_v11 = vld [vmem:[%s4076_s11 + $0x1f8] sm:$0xff]  ;;  %v1068_v12 = vld [vmem:[%s4076_s11 + $0x228] sm:$0xff]  ;;  %v2777_v15 = vpack.c.bf16 %v1055_v7, %v1049_v6 }
 0x219   : > { %2740 = vmatprep.subr.bf16.mxu0 %v2739_v60  ;;  %v1060_v13 = vld [vmem:[%s4076_s11 + $0x1e8] sm:$0xff]  ;;  %v1066_v14 = vld [vmem:[%s4076_s11 + $0x218] sm:$0xff]  ;;  %v2745_v16 = vpack.c.bf16 %v1053_v10, %v1047_v8  ;;  %v2779_v17 = vpack.c.bf16 %v1068_v12, %v1062_v11  ;;  %v1061_v18 = vld [vmem:[%s4076_s11 + $0x1f0] sm:$0xff] }
 0x21a   : > { %v1067_v19 = vld [vmem:[%s4076_s11 + $0x220] sm:$0xff]  ;;  %v2747_v21 = vpack.c.bf16 %v1066_v14, %v1060_v13  ;;  %v1065_v22 = vld [vmem:[%s4076_s11 + $0x210] sm:$0xff]  ;;  %v1074_v24 = vld [vmem:[%s4076_s11 + $0x258] sm:$0xff] }
 0x21b   : > { %2774 = vmatpush1.bf16.msra.mxu1 %v2773_v1  ;;  %v1059_v20 = vld [vmem:[%s4076_s11 + $0x1e0] sm:$0xff]  ;;  %v1080_v25 = vld [vmem:[%s4076_s11 + $0x288] sm:$0xff]  ;;  %v1078_v27 = vld [vmem:[%s4076_s11 + $0x278] sm:$0xff]  ;;  %v2781_v28 = vpack.c.bf16 %v1067_v19, %v1061_v18 }
 0x21c   : > { %2742 = vmatpush1.bf16.msra.mxu0 %v2741_v4  ;;  %2776 = vmatprep.subr.bf16.mxu1 %v2775_v5  ;;  %v1072_v26 = vld [vmem:[%s4076_s11 + $0x248] sm:$0xff]  ;;  %v2749_v29 = vpack.c.bf16 %v1065_v22, %v1059_v20  ;;  %v2783_v30 = vpack.c.bf16 %v1080_v25, %v1074_v24  ;;  %v1073_v31 = vld [vmem:[%s4076_s11 + $0x250] sm:$0xff]  ;;  %v1079_v32 = vld [vmem:[%s4076_s11 + $0x280] sm:$0xff] }
 0x21d   : > { %2744 = vmatprep.subr.bf16.mxu0 %v2743_v9  ;;  %v1071_v33 = vld [vmem:[%s4076_s11 + $0x240] sm:$0xff]  ;;  %v2751_v34 = vpack.c.bf16 %v1078_v27, %v1072_v26  ;;  %v1077_v35 = vld [vmem:[%s4076_s11 + $0x270] sm:$0xff]  ;;  %v1086_v36 = vld [vmem:[%s4076_s11 + $0x2b8] sm:$0xff]  ;;  %v2785_v40 = vpack.c.bf16 %v1079_v32, %v1073_v31 }
 0x21e   : > { %v1092_v37 = vld [vmem:[%s4076_s11 + $0x2e8] sm:$0xff]  ;;  %v1090_v39 = vld [vmem:[%s4076_s11 + $0x2d8] sm:$0xff]  ;;  %v2753_v41 = vpack.c.bf16 %v1077_v35, %v1071_v33  ;;  %v1085_v43 = vld [vmem:[%s4076_s11 + $0x2b0] sm:$0xff] }
 0x21f   : > { %2778 = vmatpush1.bf16.msra.mxu1 %v2777_v15  ;;  %v1084_v38 = vld [vmem:[%s4076_s11 + $0x2a8] sm:$0xff]  ;;  %v2787_v42 = vpack.c.bf16 %v1092_v37, %v1086_v36  ;;  %v1091_v44 = vld [vmem:[%s4076_s11 + $0x2e0] sm:$0xff]  ;;  %v1089_v47 = vld [vmem:[%s4076_s11 + $0x2d0] sm:$0xff]  ;;  %v1097_v36 = vlaneseq }
 0x220   : > { %2746 = vmatpush1.bf16.msra.mxu0 %v2745_v16  ;;  %2780 = vmatprep.subr.bf16.mxu1 %v2779_v17  ;;  %v2755_v45 = vpack.c.bf16 %v1090_v39, %v1084_v38  ;;  %v1083_v46 = vld [vmem:[%s4076_s11 + $0x2a0] sm:$0xff]  ;;  %v1004_v48 = vld [vmem:[%s4076_s11 + $0x28] sm:$0xff]  ;;  %v1010_v49 = vld [vmem:[%s4076_s11 + $0x58] sm:$0xff]  ;;  %v2789_v50 = vpack.c.bf16 %v1091_v44, %v1085_v43 }
 0x221   : > { %2748 = vmatprep.subr.bf16.mxu0 %v2747_v21  ;;  %v2757_v51 = vpack.c.bf16 %v1089_v47, %v1083_v46  ;;  %v2791_v52 = vpack.c.bf16 %v1010_v49, %v1004_v48  ;;  %v1003_v53 = vld [vmem:[%s4076_s11 + $0x20] sm:$0xff]  ;;  %v1009_v54 = vld [vmem:[%s4076_s11 + $0x50] sm:$0xff]  ;;  %v1016_v55 = vld [vmem:[%s4076_s11 + $0x88] sm:$0xff]  ;;  %v1098_v37 = vshrl.u32 %v1097_v36, 7 }
 0x222   : > { %v1022_v56 = vld [vmem:[%s4076_s11 + $0xb8] sm:$0xff]  ;;  %v4221_v57 = vld [vmem:[#allocation2] sm:$0xff]  ;;  %v2793_v58 = vpack.c.bf16 %v1009_v54, %v1003_v53  ;;  %v1021_v61 = vld [vmem:[%s4076_s11 + $0xb0] sm:$0xff] }
 0x223   : > { %2782 = vmatpush1.bf16.msra.mxu1 %v2781_v28  ;;  %v2795_v59 = vpack.c.bf16 %v1022_v56, %v1016_v55  ;;  %v1015_v60 = vld [vmem:[%s4076_s11 + $0x80] sm:$0xff]  ;;  %v1028_v62 = vld [vmem:[%s4076_s11 + $0xe8] sm:$0xff]  ;;  %v1034_v63 = vld [vmem:[%s4076_s11 + $0x118] sm:$0xff]  ;;  %v1107_v38 = vsub.s32 2, %v1098_v37  ;;  %v1115_v55 = vsub.s32 4, %v1098_v37  ;;  %v1119_v56 = vsub.s32 5, %v1098_v37 }
 0x224   : > { %2750 = vmatpush1.bf16.msra.mxu0 %v2749_v29  ;;  %2784 = vmatprep.subr.bf16.mxu1 %v2783_v30  ;;  %v2797_v0 = vpack.c.bf16 %v1021_v61, %v1015_v60  ;;  %v2799_v1 = vpack.c.bf16 %v1034_v63, %v1028_v62  ;;  %v1027_v2 = vld [vmem:[%s4076_s11 + $0xe0] sm:$0xff]  ;;  %v1033_v3 = vld [vmem:[%s4076_s11 + $0x110] sm:$0xff]  ;;  %v1040_v4 = vld [vmem:[%s4076_s11 + $0x148] sm:$0xff] }
 0x225   : > { %2752 = vmatprep.subr.bf16.mxu0 %v2751_v34  ;;  %v1046_v5 = vld [vmem:[%s4076_s11 + $0x178] sm:$0xff]  ;;  %v2801_v6 = vpack.c.bf16 %v1033_v3, %v1027_v2  ;;  %v1039_v8 = vld [vmem:[%s4076_s11 + $0x140] sm:$0xff]  ;;  %v1045_v9 = vld [vmem:[%s4076_s11 + $0x170] sm:$0xff] }
 0x226   : > { %v2803_v7 = vpack.c.bf16 %v1046_v5, %v1040_v4  ;;  %v1052_v10 = vld [vmem:[%s4076_s11 + $0x1a8] sm:$0xff]  ;;  %v1058_v11 = vld [vmem:[%s4076_s11 + $0x1d8] sm:$0xff]  ;;  %v2805_v12 = vpack.c.bf16 %v1045_v9, %v1039_v8  ;;  %v1051_v14 = vld [vmem:[%s4076_s11 + $0x1a0] sm:$0xff] }
 0x227   : > { %2786 = vmatpush1.bf16.msra.mxu1 %v2785_v40  ;;  %v2807_v13 = vpack.c.bf16 %v1058_v11, %v1052_v10  ;;  %v1057_v15 = vld [vmem:[%s4076_s11 + $0x1d0] sm:$0xff]  ;;  %v1064_v16 = vld [vmem:[%s4076_s11 + $0x208] sm:$0xff]  ;;  %v1070_v17 = vld [vmem:[%s4076_s11 + $0x238] sm:$0xff]  ;;  %v1111_v40 = vsub.s32 3, %v1098_v37 }
 0x228   : > { %2754 = vmatpush1.bf16.msra.mxu0 %v2753_v41  ;;  %2788 = vmatprep.subr.bf16.mxu1 %v2787_v42  ;;  %v2809_v18 = vpack.c.bf16 %v1057_v15, %v1051_v14  ;;  %v2811_v19 = vpack.c.bf16 %v1070_v17, %v1064_v16  ;;  %v1063_v20 = vld [vmem:[%s4076_s11 + $0x200] sm:$0xff]  ;;  %v1069_v21 = vld [vmem:[%s4076_s11 + $0x230] sm:$0xff]  ;;  %v1076_v22 = vld [vmem:[%s4076_s11 + $0x268] sm:$0xff]  ;;  %v1099_v41 = vsub.s32 0, %v1098_v37  ;;  %v1103_v42 = vsub.s32 1, %v1098_v37 }
 0x229   : > { %2756 = vmatprep.subr.bf16.mxu0 %v2755_v45  ;;  %v1082_v24 = vld [vmem:[%s4076_s11 + $0x298] sm:$0xff]  ;;  %v2813_v25 = vpack.c.bf16 %v1069_v21, %v1063_v20  ;;  %v1075_v27 = vld [vmem:[%s4076_s11 + $0x260] sm:$0xff]  ;;  %v1081_v28 = vld [vmem:[%s4076_s11 + $0x290] sm:$0xff] }
 0x22a   : > { %v2815_v26 = vpack.c.bf16 %v1082_v24, %v1076_v22  ;;  %v1088_v29 = vld [vmem:[%s4076_s11 + $0x2c8] sm:$0xff]  ;;  %v1094_v30 = vld [vmem:[%s4076_s11 + $0x2f8] sm:$0xff]  ;;  %v2817_v31 = vpack.c.bf16 %v1081_v28, %v1075_v27  ;;  %v1087_v33 = vld [vmem:[%s4076_s11 + $0x2c0] sm:$0xff] }
 0x22b   : > { %2790 = vmatpush1.bf16.msra.mxu1 %v2789_v50  ;;  %v2819_v32 = vpack.c.bf16 %v1094_v30, %v1088_v29  ;;  %v1093_v34 = vld [vmem:[%s4076_s11 + $0x2f0] sm:$0xff]  ;;  %v1095_v39 = vld [vmem:[%s4124_s15] sm:$0x3f]  ;;  %v1679_v30 = vld [vmem:[%s4082_s10 + $0x98] sm:$0xff]  ;;  %s4665_s11 = scalar_lea.vmem %s4664_s5, %s4102_s23 }
 0x22c   : > { %2758 = vmatpush1.bf16.msra.mxu0 %v2757_v51  ;;  %2612 = vmatprep.subr.mxu1 %v3535_v23  ;;  %v2821_v35 = vpack.c.bf16 %v1093_v34, %v1087_v33  ;;  %v1108_v43 = vrot.slane %v1095_v39, %v1107_v38  ;;  %v1112_v44 = vrot.slane %v1095_v39, %v1111_v40  ;;  %v2489_v3 = vld [vmem:[%s4663_s9] ss:$0 sm:$0xff]  ;;  %v1677_v22 = vld [vmem:[%s4082_s10 + $0x88] sm:$0xff]  ;;  %v1678_v29 = vld [vmem:[%s4082_s10 + $0x90] sm:$0xff]  ;;  %s4674_s9 = sld [smem:[#allocation32_spill]] }
 0x22d   : > { %2792 = vmatprep.subr.bf16.mxu0 %v2791_v52  ;;  %v1100_v45 = vrot.slane %v1095_v39, %v1099_v41  ;;  %v1104_v46 = vrot.slane %v1095_v39, %v1103_v42  ;;  %v1676_v21 = vld [vmem:[%s4082_s10 + $0x80] sm:$0xff]  ;;  %v1661_v28 = vld [vmem:[%s4082_s10 + $0x8] sm:$0xff]  ;;  %v2827_v34 = vpack.c.bf16 %v1679_v30, %v1678_v29  ;;  %v1663_v36 = vld [vmem:[%s4082_s10 + $0x18] sm:$0xff] }
 0x22e   : > { %1263 = vmatmul.mubr.f32.vlgmr.msra.gmra.mrb[0].mxu1 %v4221_v57  ;;  %v2823_v24 = vpack.c.bf16 %v1677_v22, %v1676_v21  ;;  %v1660_v27 = vld [vmem:[%s4082_s10] sm:$0xff]  ;;  %v1681_v38 = vld [vmem:[%s4082_s10 + $0xa8] sm:$0xff]  ;;  %v1802_v22 = vld [vmem:[%s4084_s0 + $0x18] sm:$0xff] }
 0x22f   : > { %1192 = vmatmul.mubr.f32.vlgmr.msra.gmra.mrb[0].mxu0 %v4221_v57  ;;  %2614 = vmatprep.mubr.msk.f32.mxu1 %vm3536_vm0, %v3535_v23  ;;  %v1680_v37 = vld [vmem:[%s4082_s10 + $0xa0] sm:$0xff] }
 0x230   : > { %2794 = vmatpush1.bf16.msra.mxu0 %v2793_v58  ;;  %1333 = vmatprep.mubr.f32.mxu0 %v3535_v23  ;;  %v1116_v58 = vrot.slane %v1095_v39, %v1115_v55  ;;  %v2831_v42 = vpack.c.bf16 %v1681_v38, %v1680_v37  ;;  %v1668_v55 = vld [vmem:[%s4082_s10 + $0x40] sm:$0xff]  ;;  %v1808_v37 = vld [vmem:[%s4084_s0 + $0x48] sm:$0xff] }
 0x231   : > { %2796 = vmatprep.subr.bf16.mxu0 %v2795_v59  ;;  %v1120_v59 = vrot.slane %v1095_v39, %v1119_v56  ;;  %v1669_v56 = vld [vmem:[%s4082_s10 + $0x48] sm:$0xff] }
 0x232   : > { %p2499_p11 = scmp.ne.s32.totalorder %s4674_s9, 1 }
 0x233   : > { %vm3539_vm2 = vmmov (!%p2499_p11), 0  }
 0x234   : > { %2798 = vmatpush1.bf16.msra.mxu0 %v2797_v0 }
 0x235   : > { %2800 = vmatprep.subr.bf16.mxu0 %v2799_v1 }
 0x238   : > { %2802 = vmatpush1.bf16.msra.mxu0 %v2801_v6 }
 0x239   : > { %2804 = vmatprep.subr.bf16.mxu0 %v2803_v7 }
 0x23c   : > { %2806 = vmatpush1.bf16.msra.mxu0 %v2805_v12 }
 0x23d   : > { %2808 = vmatprep.subr.bf16.mxu0 %v2807_v13 }
 0x240   : > { %2810 = vmatpush1.bf16.msra.mxu0 %v2809_v18 }
 0x241   : > { %2812 = vmatprep.subr.bf16.mxu0 %v2811_v19 }
 0x244   : > { %2814 = vmatpush1.bf16.msra.mxu0 %v2813_v25 }
 0x245   : > { %2816 = vmatprep.subr.bf16.mxu0 %v2815_v26 }
 0x248   : > { %2818 = vmatpush1.bf16.msra.mxu0 %v2817_v31 }
 0x249   : > { %2820 = vmatprep.subr.bf16.mxu0 %v2819_v32  ;;  %v2825_v32 = vpack.c.bf16 %v1661_v28, %v1660_v27 }
 0x24c   : > { %2822 = vmatpush1.bf16.msra.mxu0 %v2821_v35  ;;  %v1662_v35 = vld [vmem:[%s4082_s10 + $0x10] sm:$0xff] }
 0x24d   : > { %2602 = vmatprep.subr.mxu0 %v3535_v23  ;;  %v2829_v40 = vpack.c.bf16 %v1663_v36, %v1662_v35  ;;  %v1806_v35 = vld [vmem:[%s4084_s0 + $0x38] sm:$0xff] }
 0x24f   : > { %1334 = vmatmul.mubr.f32.vlgmr.msra.gmra.mrb[2].mxu0 %v4221_v57 }
 0x250   : > { %2604 = vmatprep.mubr.msk.f32.mxu0 %vm3536_vm0, %v3535_v23 }
 0x301   : > { %v1264_v47 = vpop.f32.mrb[0].mxu1 }
 0x302   : > { %v1265_v48 = vadd.f32 %v1264_v47, %v1108_v43  ;;  %v1266_v49 = vpop.f32.mrb[1].mxu1  ;;  %v1193_v50 = vpop.f32.mrb[0].mxu0  ;;  %v1664_v43 = vld [vmem:[%s4082_s10 + $0x20] sm:$0xff] }
 0x303   : > { %v1267_v51 = vadd.f32 %v1266_v49, %v1112_v44  ;;  %v1194_v52 = vadd.f32 %v1193_v50, %v1100_v45  ;;  %v1195_v53 = vpop.f32.mrb[1].mxu0  ;;  %v1665_v44 = vld [vmem:[%s4082_s10 + $0x28] sm:$0xff]  ;;  %v1682_v45 = vld [vmem:[%s4082_s10 + $0xb0] sm:$0xff]  ;;  %v1667_v50 = vld [vmem:[%s4082_s10 + $0x38] sm:$0xff] }
 0x304   : > { %2603 = vmatpush3.xpose.msra.mxu0 %v1265_v48  ;;  %v1196_v54 = vadd.f32 %v1195_v53, %v1104_v46  ;;  %v1683_v46 = vld [vmem:[%s4082_s10 + $0xb8] sm:$0xff]  ;;  %v2833_v47 = vpack.c.bf16 %v1665_v44, %v1664_v43  ;;  %v1666_v49 = vld [vmem:[%s4082_s10 + $0x30] sm:$0xff]  ;;  %v1812_v43 = vld [vmem:[%s4084_s0 + $0x68] sm:$0xff] }
 0x305   : > { %2613 = vmatpush3.xpose.msra.mxu1 %v1267_v51  ;;  %2607 = vmatprep.subr.mxu0 %v3535_v23  ;;  %v2835_v48 = vpack.c.bf16 %v1683_v46, %v1682_v45  ;;  %v1684_v51 = vld [vmem:[%s4082_s10 + $0xc0] sm:$0xff]  ;;  %v2837_v53 = vpack.c.bf16 %v1667_v50, %v1666_v49  ;;  %v1813_v45 = vld [vmem:[%s4084_s0 + $0x70] sm:$0xff]  ;;  %v1814_v46 = vld [vmem:[%s4084_s0 + $0x78] sm:$0xff] }
 0x306   : > { %2617 = vmatprep.subr.mxu1 %v3535_v23  ;;  %v1902_v49 = vld [vmem:[%s4090_s4 + $0x8] sm:$0xff] }
 0x307   : > { %2605 = vmatmul.mubr.f32.vlgmr.msra.gmra.mrb[4].mxu0 %v1194_v52  ;;  %v1685_v52 = vld [vmem:[%s4082_s10 + $0xc8] sm:$0xff] }
 0x308   : > { %2615 = vmatmul.mubr.f32.vlgmr.msra.gmra.mrb[2].mxu1 %v1196_v54  ;;  %2609 = vmatprep.mubr.msk.f32.mxu0 %vm3536_vm0, %v3535_v23  ;;  %v2839_v54 = vpack.c.bf16 %v1685_v52, %v1684_v51 }
 0x309   : > { %2619 = vmatprep.mubr.msk.f32.mxu1 %vm3536_vm0, %v3535_v23 }
 0x322   : > { %v1335_v60 = vpop.f32.mrb[2].mxu0 }
 0x323   : > { %v1336_v61 = vadd.f32 %v1335_v60, %v1116_v58  ;;  %v1337_v62 = vpop.f32.mrb[3].mxu0  ;;  %v1686_v58 = vld [vmem:[%s4082_s10 + $0xd0] sm:$0xff]  ;;  %v2841_v60 = vpack.c.bf16 %v1669_v56, %v1668_v55 }
 0x324   : > { %v1338_v63 = vadd.f32 %v1337_v62, %v1120_v59  ;;  %v1687_v59 = vld [vmem:[%s4082_s10 + $0xd8] sm:$0xff]  ;;  %v1670_v62 = vld [vmem:[%s4082_s10 + $0x50] sm:$0xff] }
 0x325   : > { %2608 = vmatpush3.msra.mxu0 %v1336_v61  ;;  %v2843_v61 = vpack.c.bf16 %v1687_v59, %v1686_v58 }
 0x326   : > { %2618 = vmatpush3.msra.mxu1 %v1338_v63  ;;  %v1671_v63 = vld [vmem:[%s4082_s10 + $0x58] sm:$0xff] }
 0x327   : > { %2824 = vmatprep.subr.bf16.mxu1 %v2823_v24 }
 0x3da   : > { %v1407_v0 = vpop.f32.mrb[4].mxu0 }
 0x3db   : > { %v2606_v1 = vpop.f32.mrb[5].mxu0  ;;  %v1570_v2 = vpop.f32.mrb[2].mxu1  ;;  %v1411_v4 = vmul.f32 0.25, %v1407_v0  ;;  %v1688_v0 = vld [vmem:[%s4082_s10 + $0xe0] sm:$0xff] }
 0x3dc   : > { %v1574_v5 = vmul.f32 0.25, %v1570_v2  ;;  %v2616_v6 = vpop.f32.mrb[3].mxu1  ;;  %v1689_v1 = vld [vmem:[%s4082_s10 + $0xe8] sm:$0xff]  ;;  %v2845_v2 = vpack.c.bf16 %v1671_v63, %v1670_v62  ;;  %v2494_v63 = vld [vmem:[%s4669_s8] ss:$0 sm:$0xff] }
 0x3dd   : > { %v1418_v9 = vadd.f32 %v2489_v3, %v1411_v4  ;;  %v1672_v4 = vld [vmem:[%s4082_s10 + $0x60] sm:$0xff] }
 0x3de   : > { %v1575_v7 = vadd.f32 %v2489_v3, %v1574_v5  ;;  %v2847_v3 = vpack.c.bf16 %v1689_v1, %v1688_v0  ;;  %v1673_v5 = vld [vmem:[%s4082_s10 + $0x68] sm:$0xff] }
 0x3df   : > { %v1420_v10 = vsel %vm1419_vm1, %v1418_v9, -inf  ;;  %v2849_v6 = vpack.c.bf16 %v1673_v5, %v1672_v4  ;;  %v1905_v5 = vld [vmem:[%s4090_s4 + $0x20] sm:$0xff] }
 0x3e0   : > { %v1576_v8 = vsel %vm1419_vm1, %v1575_v7, -inf }
 0x3e1   : > { %1577 = vmax.xlane.f32.xlu0 %v1576_v8  ;;  %v1691_v8 = vld [vmem:[%s4082_s10 + $0xf8] sm:$0xff] }
 0x3e5   : > { %1421 = vmax.xlane.f32.xlu0 %v1420_v10  ;;  %v1674_v10 = vld [vmem:[%s4082_s10 + $0x70] sm:$0xff] }
 0x46e   : > { %v1578_v11 = vpop.xlane.xlu0 %1577 }
 0x46f   : > { %v1579_v12 = vsub.f32 %v1575_v7, %v1578_v11  ;;  %v1690_v7 = vld [vmem:[%s4082_s10 + $0xf0] sm:$0xff]  ;;  %v1675_v11 = vld [vmem:[%s4082_s10 + $0x78] sm:$0xff] }
 0x471   : > { %v1580_v13 = vmul.f32 1.442695, %v1579_v12  ;;  %v2853_v12 = vpack.c.bf16 %v1675_v11, %v1674_v10  ;;  %v1909_v11 = vld [vmem:[%s4090_s4 + $0x40] sm:$0xff] }
 0x472   : > { %v1422_v14 = vpop.xlane.xlu0 %1421 }
 0x473   : > { %3101 = vpow2.f32 %v1580_v13  ;;  %v1423_v15 = vsub.f32 %v1418_v9, %v1422_v14  ;;  %v2851_v9 = vpack.c.bf16 %v1691_v8, %v1690_v7  ;;  %v1907_v8 = vld [vmem:[%s4090_s4 + $0x30] sm:$0xff] }
 0x475   : > { %v1424_v16 = vmul.f32 1.442695, %v1423_v15 }
 0x477   : > { %3103 = vpow2.f32 %v1424_v16 }
 0x47d   : > { %v3102_v17 = vpop.eup %3101 }
 0x47e   : > { %v1582_v18 = vsel %vm1419_vm1, %v3102_v17, 0.0 }
 0x47f   : > { %1583 = vadd.xlane.f32.xlu1 %v1582_v18  ;;  %v1800_v18 = vld [vmem:[%s4084_s0 + $0x8] sm:$0xff] }
 0x481   : > { %v3104_v19 = vpop.eup %3103 }
 0x482   : > { %v1426_v20 = vsel %vm1419_vm1, %v3104_v19, 0.0 }
 0x483   : > { %1427 = vadd.xlane.f32.xlu1 %v1426_v20  ;;  %v3537_v20 = vmov 0.0|0.0  }
 0x484   : > { %2855 = vmatprep.subr.bf16.mxu0 %v3537_v20 }
 0x50c   : > { %v1584_v25 = vpop.xlane.xlu1 %1583 }
 0x50d   : > { %3105 = vrcp.f32 %v1584_v25  ;;  %v2492_v25 = vld [vmem:[%s4665_s11] ss:$0 sm:$0xff] }
 0x510   : > { %v1428_v26 = vpop.xlane.xlu1 %1427 }
 0x511   : > { %3107 = vrcp.f32 %v1428_v26 }
 0x517   : > { %v3106_v31 = vpop.eup %3105 }
 0x518   : > { %v1586_v33 = vmul.f32 %v3106_v31, %v3102_v17  ;;  %v1799_v17 = vld [vmem:[%s4084_s0] sm:$0xff] }
 0x519   : > { %v2856_v21 = vpack.c.bf16 %v1800_v18, %v1799_v17  ;;  %v1803_v31 = vld [vmem:[%s4084_s0 + $0x20] sm:$0xff]  ;;  %v1914_v18 = vld [vmem:[%s4090_s4 + $0x68] sm:$0xff] }
 0x51a   : > { %2620 = vmatmul.mubr.msk.f32.vlgmr.msra.gmra.mrb[4].mxu1 %vm1419_vm1, %v1586_v33  ;;  %v1913_v17 = vld [vmem:[%s4090_s4 + $0x60] sm:$0xff] }
 0x51b   : > { %v3108_v39 = vpop.eup %3107  ;;  %2826 = vmatpush3.bf16.msra.mxu1 %v2825_v32  ;;  %v1804_v32 = vld [vmem:[%s4084_s0 + $0x28] sm:$0xff] }
 0x51c   : > { %v1430_v41 = vmul.f32 %v3108_v39, %v3104_v19  ;;  %2828 = vmatprep.subr.bf16.mxu1 %v2827_v34  ;;  %v1801_v19 = vld [vmem:[%s4084_s0 + $0x10] sm:$0xff]  ;;  %v2862_v33 = vpack.c.bf16 %v1804_v32, %v1803_v31 }
 0x51d   : > { %v2859_v24 = vpack.c.bf16 %v1802_v22, %v1801_v19  ;;  %v1805_v34 = vld [vmem:[%s4084_s0 + $0x30] sm:$0xff]  ;;  %v2898_v19 = vpack.c.bf16 %v1914_v18, %v1913_v17  ;;  %v1916_v22 = vld [vmem:[%s4090_s4 + $0x78] sm:$0xff] }
 0x51e   : > { %2610 = vmatmul.mubr.msk.f32.vlgmr.msra.gmra.mrb[6].mxu0 %vm1419_vm1, %v1430_v41  ;;  %v2865_v36 = vpack.c.bf16 %v1806_v35, %v1805_v34  ;;  %v1809_v39 = vld [vmem:[%s4084_s0 + $0x50] sm:$0xff] }
 0x51f   : > { %2830 = vmatpush3.bf16.msra.mxu1 %v2829_v40  ;;  %2654 = vmatprep.mubr.msk.f32.mxu0 %vm3536_vm0, %v3535_v23  ;;  %v1810_v40 = vld [vmem:[%s4084_s0 + $0x58] sm:$0xff] }
 0x520   : > { %2832 = vmatprep.subr.bf16.mxu1 %v2831_v42  ;;  %2857 = vmatpush3.bf16.msra.mxu0 %v2856_v21  ;;  %v2871_v41 = vpack.c.bf16 %v1810_v40, %v1809_v39  ;;  %v1811_v42 = vld [vmem:[%s4084_s0 + $0x60] sm:$0xff]  ;;  %v1915_v21 = vld [vmem:[%s4090_s4 + $0x70] sm:$0xff] }
 0x521   : > { %2858 = vmatprep.subr.bf16.mxu0 %v3537_v20  ;;  %v2874_v44 = vpack.c.bf16 %v1812_v43, %v1811_v42 }
 0x523   : > { %2834 = vmatpush3.bf16.msra.mxu1 %v2833_v47  ;;  %v2877_v47 = vpack.c.bf16 %v1814_v46, %v1813_v45 }
 0x524   : > { %2836 = vmatprep.subr.bf16.mxu1 %v2835_v48  ;;  %2860 = vmatpush3.bf16.msra.mxu0 %v2859_v24  ;;  %v1901_v48 = vld [vmem:[%s4090_s4] sm:$0xff]  ;;  %v2901_v24 = vpack.c.bf16 %v1916_v22, %v1915_v21 }
 0x525   : > { %2861 = vmatprep.subr.bf16.mxu0 %v3537_v20  ;;  %v2880_v50 = vpack.c.bf16 %v1902_v49, %v1901_v48 }
 0x527   : > { %2838 = vmatpush3.bf16.msra.mxu1 %v2837_v53 }
 0x528   : > { %2840 = vmatprep.subr.bf16.mxu1 %v2839_v54  ;;  %2863 = vmatpush3.bf16.msra.mxu0 %v2862_v33 }
 0x529   : > { %2864 = vmatprep.subr.bf16.mxu0 %v3537_v20 }
 0x52b   : > { %2842 = vmatpush3.bf16.msra.mxu1 %v2841_v60 }
 0x52c   : > { %2844 = vmatprep.subr.bf16.mxu1 %v2843_v61  ;;  %2866 = vmatpush3.bf16.msra.mxu0 %v2865_v36  ;;  %v2493_v61 = vld [vmem:[%s4667_s19] ss:$0 sm:$0xff] }
 0x52d   : > { %2867 = vmatprep.subr.bf16.mxu0 %v3537_v20  ;;  %v2496_v36 = vld [vmem:[%s956_s25] ss:$0 sm:$0xff] }
 0x52f   : > { %2846 = vmatpush3.bf16.msra.mxu1 %v2845_v2  ;;  %v1903_v2 = vld [vmem:[%s4090_s4 + $0x10] sm:$0xff] }
 0x530   : > { %2848 = vmatprep.subr.bf16.mxu1 %v2847_v3  ;;  %v1904_v3 = vld [vmem:[%s4090_s4 + $0x18] sm:$0xff] }
 0x531   : > { %v2883_v4 = vpack.c.bf16 %v1904_v3, %v1903_v2  ;;  %v2036_v3 = vld [vmem:[#allocation15 + $0x30] sm:$0xff] (!%p2499_p11) }
 0x533   : > { %2850 = vmatpush3.bf16.msra.mxu1 %v2849_v6  ;;  %v1906_v6 = vld [vmem:[%s4090_s4 + $0x28] sm:$0xff] }
 0x534   : > { %2852 = vmatprep.subr.bf16.mxu1 %v2851_v9  ;;  %v2886_v7 = vpack.c.bf16 %v1906_v6, %v1905_v5  ;;  %v1908_v9 = vld [vmem:[%s4090_s4 + $0x38] sm:$0xff]  ;;  %v2038_v6 = vld [vmem:[#allocation15 + $0x40] sm:$0xff] (!%p2499_p11) }
 0x535   : > { %v2889_v10 = vpack.c.bf16 %v1908_v9, %v1907_v8  ;;  %v2040_v9 = vld [vmem:[#allocation15 + $0x50] sm:$0xff] (!%p2499_p11) }
 0x537   : > { %2854 = vmatpush3.bf16.msra.mxu1 %v2853_v12  ;;  %v1910_v12 = vld [vmem:[%s4090_s4 + $0x48] sm:$0xff] }
 0x538   : > { %2879 = vmatprep.subr.bf16.mxu1 %v3537_v20 }
 0x5ed   : > { %v1656_v13 = vpop.f32.mrb[4].mxu1 }
 0x5ee   : > { %v2621_v14 = vpop.f32.mrb[5].mxu1  ;;  %1763 = vmatprep.mubr.f32.mxu1 %v1656_v13  ;;  %v2892_v13 = vpack.c.bf16 %v1910_v12, %v1909_v11  ;;  %v2042_v12 = vld [vmem:[#allocation15 + $0x60] sm:$0xff] (!%p2499_p11) }
 0x5ef   : > { %v1911_v14 = vld [vmem:[%s4090_s4 + $0x50] sm:$0xff] }
 0x5f1   : > { %v1500_v15 = vpop.f32.mrb[6].mxu0 }
 0x5f2   : > { %v2611_v16 = vpop.f32.mrb[7].mxu0  ;;  %1764 = vmatmul.mubr.f32.vlgmr.msra.gmra.mrb[6].mxu1 %v1500_v15  ;;  %v1912_v15 = vld [vmem:[%s4090_s4 + $0x58] sm:$0xff] }
 0x5f3   : > { %2689 = vmatprep.mubr.msk.f32.mxu1 %vm3536_vm0, %v3535_v23  ;;  %2881 = vmatpush3.bf16.msra.mxu1 %v2880_v50  ;;  %v2895_v16 = vpack.c.bf16 %v1912_v15, %v1911_v14  ;;  %v2497_v50 = vld [vmem:[%s959_s12] ss:$0 sm:$0xff]  ;;  %v2044_v15 = vld [vmem:[#allocation15 + $0x70] sm:$0xff] (!%p2499_p11) }
 0x5f4   : > { %2882 = vmatprep.subr.bf16.mxu1 %v3537_v20 }
 0x5f7   : > { %2884 = vmatpush3.bf16.msra.mxu1 %v2883_v4  ;;  %v2037_v4 = vld [vmem:[#allocation15 + $0x38] sm:$0xff] (!%p2499_p11) }
 0x5f8   : > { %2885 = vmatprep.subr.bf16.mxu1 %v3537_v20  ;;  %v2913_v5 = vpack.c.bf16 (!%p2499_p11), %v2037_v4, %v2036_v3 }
 0x5fb   : > { %2887 = vmatpush3.bf16.msra.mxu1 %v2886_v7  ;;  %v2039_v7 = vld [vmem:[#allocation15 + $0x48] sm:$0xff] (!%p2499_p11) }
 0x5fc   : > { %2888 = vmatprep.subr.bf16.mxu1 %v3537_v20  ;;  %v2916_v8 = vpack.c.bf16 (!%p2499_p11), %v2039_v7, %v2038_v6 }
 0x5ff   : > { %2890 = vmatpush3.bf16.msra.mxu1 %v2889_v10  ;;  %v2041_v10 = vld [vmem:[#allocation15 + $0x58] sm:$0xff] (!%p2499_p11) }
 0x600   : > { %2891 = vmatprep.subr.bf16.mxu1 %v3537_v20  ;;  %v2919_v11 = vpack.c.bf16 (!%p2499_p11), %v2041_v10, %v2040_v9 }
 0x603   : > { %2893 = vmatpush3.bf16.msra.mxu1 %v2892_v13  ;;  %v2043_v13 = vld [vmem:[#allocation15 + $0x68] sm:$0xff] (!%p2499_p11) }
 0x604   : > { %2894 = vmatprep.subr.bf16.mxu1 %v3537_v20  ;;  %v2922_v14 = vpack.c.bf16 (!%p2499_p11), %v2043_v13, %v2042_v12 }
 0x607   : > { %2896 = vmatpush3.bf16.msra.mxu1 %v2895_v16  ;;  %v2045_v16 = vld [vmem:[#allocation15 + $0x78] sm:$0xff] (!%p2499_p11) }
 0x608   : > { %2897 = vmatprep.subr.bf16.mxu1 %v3537_v20  ;;  %v2925_v17 = vpack.c.bf16 (!%p2499_p11), %v2045_v16, %v2044_v15 }
 0x60b   : > { %2899 = vmatpush3.bf16.msra.mxu1 %v2898_v19 }
 0x60c   : > { %2900 = vmatprep.subr.bf16.mxu1 %v3537_v20 }
 0x60f   : > { %2902 = vmatpush3.bf16.msra.mxu1 %v2901_v24 }
 0x6c5   : > { %v2548_v23 = vpop.f32.mrb[6].mxu1 }
 0x6c6   : > { %v2549_v26 = vpop.f32.mrb[7].mxu1 }
 0x6c7   : > { %v2550_v27 = vadd.f32 %v2549_v26, %v2548_v23  ;;  %v2495_v23 = vld [vmem:[%s953_s3] ss:$0 sm:$0xff] }
 0x6c9   : > { %v1766_v28 = vadd.f32 %v2550_v27, %v2492_v25 }
 0x6cb   : > { %v1769_v29 = vadd.f32 %v1766_v28, %v4221_v57  ;;  %v1807_v57 = vld [vmem:[%s4084_s0 + $0x40] sm:$0xff] }
 0x6cc   : > { %v2868_v38 = vpack.c.bf16 %v1808_v37, %v1807_v57 }
 0x6cd   : > { %1772 = vadd.xlane.f32.xlu0 %v1769_v29  ;;  %v1775_v30 = vmul.f32 %v1769_v29, %v1769_v29 }
 0x6ce   : > { %2869 = vmatpush3.bf16.msra.mxu0 %v2868_v38 }
 0x6cf   : > { %1776 = vadd.xlane.f32.xlu1 %v1775_v30  ;;  %2870 = vmatprep.subr.bf16.mxu0 %v3537_v20 }
 0x6d2   : > { %2872 = vmatpush3.bf16.msra.mxu0 %v2871_v41 }
 0x6d3   : > { %2873 = vmatprep.subr.bf16.mxu0 %v3537_v20 }
 0x6d6   : > { %2875 = vmatpush3.bf16.msra.mxu0 %v2874_v44 }
 0x6d7   : > { %2876 = vmatprep.subr.bf16.mxu0 %v3537_v20 }
 0x6da   : > { %2878 = vmatpush3.bf16.msra.mxu0 %v2877_v47 }
 0x75a   : > { %v1773_v51 = vpop.xlane.xlu0 %1772 }
 0x75b   : > { %v1774_v52 = vmul.f32 0.03125, %v1773_v51 }
 0x75c   : > { %v1777_v53 = vpop.xlane.xlu1 %1776 }
 0x75d   : > { %v1779_v54 = vmul.f32 %v1774_v52, %v1774_v52  ;;  %v1778_v55 = vmul.f32 0.03125, %v1777_v53  ;;  %v1781_v59 = vsub.f32 %v1769_v29, %v1774_v52  ;;  %v2498_v52 = vld [vmem:[%s962_s2] ss:$0 sm:$0xff]  ;;  %s4675_s2 = sld [smem:[#allocation64_spill]] (!%p2499_p11) }
 0x75f   : > { %v1780_v56 = vsub.f32 %v1778_v55, %v1779_v54  ;;  %v2030_v55 = vld [vmem:[#allocation15] sm:$0xff] (!%p2499_p11) }
 0x761   : > { %v1782_v58 = vadd.f32 1e-12, %v1780_v56  ;;  %v2031_v56 = vld [vmem:[#allocation15 + $0x8] sm:$0xff] (!%p2499_p11) }
 0x763   : > { %3109 = vrsqrt.f32 %v1782_v58  ;;  %v2032_v58 = vld [vmem:[#allocation15 + $0x10] sm:$0xff] (!%p2499_p11)  ;;  %v2046_v18 = vld [vmem:[%s4675_s2] sm:$0x1] (!%p2499_p11) }
 0x76d   : > { %v3110_v60 = vpop.eup %3109 }
 0x76e   : > { %v1784_v62 = vmul.f32 %v3110_v60, %v1781_v59  ;;  %v3538_v59 = vmov (!%p2499_p11), 0.0|0.0   ;;  %v2904_v60 = vpack.c.bf16 (!%p2499_p11), %v2031_v56, %v2030_v55 }
 0x76f   : > { %2903 = vmatprep.subr.bf16.mxu0 (!%p2499_p11), %v3538_v59 }
 0x770   : > { %v1791_v0 = vmul.f32 %v2493_v61, %v1784_v62  ;;  %v2033_v61 = vld [vmem:[#allocation15 + $0x18] sm:$0xff] (!%p2499_p11)  ;;  %v3540_v62 = vmov (!%p2499_p11), 0.0  }
 0x772   : > { %v1798_v1 = vadd.f32 %v2494_v63, %v1791_v0  ;;  %v2907_v63 = vpack.c.bf16 (!%p2499_p11), %v2033_v61, %v2032_v58  ;;  %v2034_v0 = vld [vmem:[#allocation15 + $0x20] sm:$0xff] (!%p2499_p11) }
 0x774   : > { %2655 = vmatmul.mubr.f32.vlgmr.msra.gmra.mrb[8].mxu0 %v1798_v1 }
 0x775   : > { %2724 = vmatprep.mubr.msk.f32.mxu0 (!%p2499_p11), %vm3539_vm2, %v3540_v62  ;;  %2905 = vmatpush3.bf16.msra.mxu0 (!%p2499_p11), %v2904_v60 }
 0x776   : > { %2906 = vmatprep.subr.bf16.mxu0 (!%p2499_p11), %v3538_v59 }
 0x779   : > { %2908 = vmatpush3.bf16.msra.mxu0 (!%p2499_p11), %v2907_v63 }
 0x77a   : > { %2909 = vmatprep.subr.bf16.mxu0 (!%p2499_p11), %v3538_v59 }
 0x847   : > { %v1888_v25 = vpop.f32.mrb[8].mxu0 }
 0x848   : > { %v1889_v26 = vadd.f32 %v2495_v23, %v1888_v25  ;;  %v2656_v27 = vpop.f32.mrb[9].mxu0 }
 0x84a   : > { %v1892_v28 = vmul.f32 %v1889_v26, %v1889_v26 }
 0x84c   : > { %v1893_v29 = vmul.f32 %v1892_v28, %v1889_v26 }
 0x84e   : > { %v1894_v30 = vmul.f32 0.044715, %v1893_v29 }
 0x850   : > { %v1895_v31 = vadd.f32 %v1894_v30, %v1889_v26 }
 0x852   : > { %v1896_v32 = vmul.f32 0.7978846, %v1895_v31 }
 0x854   : > { %3111 = vtanh.f32 %v1896_v32 }
 0x85e   : > { %v3112_v33 = vpop.eup %3111 }
 0x85f   : > { %v1898_v34 = vadd.f32 1.0, %v3112_v33 }
 0x861   : > { %v1899_v35 = vmul.f32 0.5, %v1898_v34 }
 0x863   : > { %v1900_v20 = vmul.f32 %v1899_v35, %v1889_v26 }
 0x865   : > { %2690 = vmatmul.mubr.f32.vlgmr.msra.gmra.mrb[8].mxu1 %v1900_v20 }
 0x938   : > { %v1990_v57 = vpop.f32.mrb[8].mxu1 }
 0x939   : > { %v1991_v37 = vadd.f32 %v2496_v36, %v1990_v57  ;;  %v2691_v38 = vpop.f32.mrb[9].mxu1 }
 0x93b   : > { %v1994_v39 = vadd.f32 %v1991_v37, %v1798_v1  ;;  %v2035_v1 = vld [vmem:[#allocation15 + $0x28] sm:$0xff] (!%p2499_p11) }
 0x93c   : > { %v2910_v2 = vpack.c.bf16 (!%p2499_p11), %v2035_v1, %v2034_v0 }
 0x93d   : > { %1997 = vadd.xlane.f32.xlu0 %v1994_v39  ;;  %v2000_v40 = vmul.f32 %v1994_v39, %v1994_v39 }
 0x93e   : > { %2911 = vmatpush3.bf16.msra.mxu0 (!%p2499_p11), %v2910_v2 }
 0x93f   : > { %2001 = vadd.xlane.f32.xlu1 %v2000_v40  ;;  %2912 = vmatprep.subr.bf16.mxu0 (!%p2499_p11), %v3538_v59 }
 0x942   : > { %2914 = vmatpush3.bf16.msra.mxu0 (!%p2499_p11), %v2913_v5 }
 0x943   : > { %2915 = vmatprep.subr.bf16.mxu0 (!%p2499_p11), %v3538_v59 }
 0x946   : > { %2917 = vmatpush3.bf16.msra.mxu0 (!%p2499_p11), %v2916_v8 }
 0x947   : > { %2918 = vmatprep.subr.bf16.mxu0 (!%p2499_p11), %v3538_v59 }
 0x94a   : > { %2920 = vmatpush3.bf16.msra.mxu0 (!%p2499_p11), %v2919_v11 }
 0x94b   : > { %2921 = vmatprep.subr.bf16.mxu0 (!%p2499_p11), %v3538_v59 }
 0x94e   : > { %2923 = vmatpush3.bf16.msra.mxu0 (!%p2499_p11), %v2922_v14 }
 0x94f   : > { %2924 = vmatprep.subr.bf16.mxu0 (!%p2499_p11), %v3538_v59 }
 0x952   : > { %2926 = vmatpush3.bf16.msra.mxu0 (!%p2499_p11), %v2925_v17 }
 0x9ca   : > { %v1998_v41 = vpop.xlane.xlu0 %1997 }
 0x9cb   : > { %v1999_v42 = vmul.f32 0.03125, %v1998_v41 }
 0x9cc   : > { %v2002_v43 = vpop.xlane.xlu1 %2001 }
 0x9cd   : > { %v2004_v44 = vmul.f32 %v1999_v42, %v1999_v42  ;;  %v2003_v45 = vmul.f32 0.03125, %v2002_v43  ;;  %v2006_v48 = vsub.f32 %v1994_v39, %v1999_v42 }
 0x9cf   : > { %v2005_v46 = vsub.f32 %v2003_v45, %v2004_v44 }
 0x9d1   : > { %v2007_v47 = vadd.f32 1e-12, %v2005_v46 }
 0x9d3   : > { %3113 = vrsqrt.f32 %v2007_v47 }
 0x9dd   : > { %v3114_v49 = vpop.eup %3113 }
 0x9de   : > { %v2009_v51 = vmul.f32 %v3114_v49, %v2006_v48  ;;  %2028 = sbr.rel (%p2499_p11) target bundleno = 2758 (0xac6), region = 132 }
 0x9e0   : > { %v2016_v53 = vmul.f32 %v2497_v50, %v2009_v51 }
 0x9e2   : > { %v2023_v54 = vadd.f32 %v2498_v52, %v2016_v53 }
 0x9e4   : > { %2024 = vst [vmem:[#allocation2] sm:$0xff] %v2023_v54  ;;  %2029 = vst [vmem:[%s4144_s1] sm:$0xff] (!%p2499_p11), %v2023_v54  ;;  %2725 = vmatmul.mubr.f32.vlgmr.msra.gmra.mrb[0].mxu0 (!%p2499_p11), %v2023_v54 }
 0xab7   : > { %v2113_v19 = vpop.f32.mrb[0].mxu0 }
 0xab8   : > { %v2114_v21 = vadd.f32 %v2113_v19, %v2046_v18  ;;  %v2726_v22 = vpop.f32.mrb[1].mxu0 }
 0xaba   : > { %3115 = vtanh.f32 %v2114_v21 }
 0xac4   : > { %v3116_v24 = vpop.eup %3115 }
 0xac5   : > { %2118 = vst [vmem:[%s934_s20] sm:$0x1] %v3116_v24 }
 0xac6 PF: > { %s4676_s30 = sld [smem:[#allocation33_spill]]  ;;  %s4677_s15 = sld [smem:[#allocation44_spill]] }
 0xac7   : > { %s4678_s0 = sld [smem:[#allocation65_spill]]  ;;  %s2137_s26 = sshll.u32 %s4144_s1, 4  ;;  %s2138_s26 = int_to_ptr.vmem [resolvable:$true] %s2137_s26 }
 0xac8   : > { %s2120_s17 = scalar_lea.sflag [#allocation5], %s4058_s7  ;;  %s3351_s27 = scalar_lea.vmem %s2138_s26, 128 }
 0xac9   : > { %p3352_p9 = scmp.ne.s32.totalorder %s2138_s26, %s3351_s27  ;;  %s3541_s8 = smov [#allocation17]  }
 0xaca   : > { %s3355_s18 = sshll.u32 %s3541_s8, 4  ;;  %s3356_s18 = int_to_ptr.vmem [resolvable:$false] %s3355_s18 }
 0xacb   : > { %s3357_s28 = scalar_lea.vmem %s3356_s18, 256  ;;  %p3358_p13 = scmp.lt.s32.totalorder %s2138_s26, %s3356_s18 }
 0xacc   : > { %s2501_s5 = sshll.u32 %s4676_s30, 7  ;;  %p4680_p8 = scmp.ne.s32.totalorder %s4677_s15, 0 }
 0xacd   : > { %s4679_s14 = smov %s4678_s0  ;;  %s4408_s19 = scalar_lea.hbm %s4678_s0, %s2501_s5 }
 0xace   : > { %p3353_p12 = pnand %p3352_p9, %p4680_p8  ;;  %p3359_p10 = scmp.lt.s32.totalorder %s3357_s28, %s3351_s27 }
 0xad0   : > { %p3354_p6 = pneg %p3353_p12  ;;  %p3360_p1 = por %p3359_p10, %p3358_p13 }
 0xad2   : > { %p3361_p2 = pnand %p3360_p1, %p3354_p6 }
 0xad4   : > { %3364 = shalt.err (!%p3361_p2)
}
 0xad5   : > { %s3365_s1 = scalar_lea.hbm %s4408_s19, 128  ;;  %s3369_s29 = scalar_lea.hbm %s4679_s14, 256 }
 0xad6   : > { %p3366_p3 = scmp.ne.s32.totalorder %s4408_s19, %s3365_s1  ;;  %p3370_p5 = scmp.lt.u32.totalorder %s4408_s19, %s4679_s14 }
 0xad7   : > { %p3371_p7 = scmp.lt.u32.totalorder %s3369_s29, %s3365_s1  ;;  %p3373_p9 = scmp.lt.u32.totalorder %s3365_s1, %s4408_s19 }
 0xad8   : > { %p3367_p0 = pnand %p3366_p3, %p4680_p8 }
 0xad9   : > { %p3372_p11 = por %p3371_p7, %p3370_p5 }
 0xada   : > { %p3368_p4 = pneg %p3367_p0 }
 0xadb   : > { %p3374_p12 = por %p3373_p9, %p3372_p11 }
 0xadd   : > { %p3375_p6 = pnand %p3374_p12, %p3368_p4 }
 0xadf   : > { %3378 = shalt.err (!%p3375_p6)
}
 0xae0   : > { %2953 = dma.vmem_to_hbm [thread:$0]  (%p4680_p8), %s2138_s26, 128, %s4408_s19, %s2120_s17  }
 0xae1   : > { %s2502_s25 = sshll.u32 %s4676_s30, 4  ;;  %s2150_s13 = sshll.u32 %s934_s20, 4  ;;  %s2151_s13 = int_to_ptr.vmem [resolvable:$true] %s2150_s13 }
 0xae2   : > { %s4681_s22 = sld [smem:[#allocation66_spill]]  ;;  %s2125_s12 = scalar_lea.sflag [#allocation19], %s4058_s7 }
 0xae3   : > { %s3379_s2 = scalar_lea.vmem %s2151_s13, 16  ;;  %s3542_s5 = smov [#allocation18]  }
 0xae4   : > { %p3380_p13 = scmp.ne.s32.totalorder %s2151_s13, %s3379_s2  ;;  %s3383_s11 = sshll.u32 %s3542_s5, 4  ;;  %s3384_s11 = int_to_ptr.vmem [resolvable:$false] %s3383_s11 }
 0xae5   : > { %s3385_s10 = scalar_lea.vmem %s3384_s11, 32  ;;  %p3386_p2 = scmp.lt.s32.totalorder %s2151_s13, %s3384_s11 }
 0xae6   : > { %p3381_p10 = pnand %p3380_p13, %p4680_p8  ;;  %p3387_p3 = scmp.lt.s32.totalorder %s3385_s10, %s3379_s2 }
 0xae8   : > { %s4682_s9 = smov %s4681_s22  ;;  %s4435_s23 = scalar_lea.hbm %s4681_s22, %s2502_s25 }
 0xae9   : > { %p3382_p1 = pneg %p3381_p10  ;;  %p3388_p0 = por %p3387_p3, %p3386_p2 }
 0xaeb   : > { %p3389_p4 = pnand %p3388_p0, %p3382_p1 }
 0xaed   : > { %3392 = shalt.err (!%p3389_p4)
}
 0xaee   : > { %s3393_s7 = scalar_lea.hbm %s4435_s23, 16  ;;  %s3397_s0 = scalar_lea.hbm %s4682_s9, 32 }
 0xaef   : > { %p3394_p5 = scmp.ne.s32.totalorder %s4435_s23, %s3393_s7  ;;  %p3398_p9 = scmp.lt.u32.totalorder %s4435_s23, %s4682_s9 }
 0xaf0   : > { %p3399_p12 = scmp.lt.u32.totalorder %s3397_s0, %s3393_s7  ;;  %p3401_p13 = scmp.lt.u32.totalorder %s3393_s7, %s4435_s23 }
 0xaf1   : > { %p3395_p7 = pnand %p3394_p5, %p4680_p8 }
 0xaf2   : > { %p3400_p6 = por %p3399_p12, %p3398_p9 }
 0xaf3   : > { %p3396_p11 = pneg %p3395_p7 }
 0xaf4   : > { %p3402_p10 = por %p3401_p13, %p3400_p6 }
 0xaf6   : > { %p3403_p1 = pnand %p3402_p10, %p3396_p11 }
 0xaf8   : > { %3406 = shalt.err (!%p3403_p1)
}
 0xaf9   : > { %2954 = dma.vmem_to_hbm [thread:$0]  (%p4680_p8), %s2151_s13, 16, %s4435_s23, %s2125_s12  }
 0xafa PF: > { %s4683_s17 = sld [smem:[#allocation36_spill]]  ;;  %s4684_s27 = sld [smem:[#allocation29_spill]] }
 0xafb   : > { %s4685_s8 = sld [smem:[#allocation46_spill]] }
 0xb00   : > { %p2997_p2 = scmp.ge.s32.totalorder %s4683_s17, 2  ;;  %s2162_s18 = sand.u32 1, %s4684_s27  }
 0xb01   : > { %p4686_p3 = scmp.ne.s32.totalorder %s4685_s8, 0  ;;  %s2163_s28 = scalar_lea.sflag [#allocation5], %s2162_s18 }
 0xb03   : > { %p2984_p0 = pnand %p2997_p2, %p4686_p3 }
 0xb05   : > { %3472 = dma.done.wait (!%p2984_p0), %s2163_s28, 128  }
 0xb06   : > { %3474 = vsyncadd (!%p2984_p0), %s2163_s28, 4294967168  ;;  %s2172_s1 = scalar_lea.sflag [#allocation19], %s2162_s18 }
 0xb07   : > { %3476 = dma.done.wait (!%p2984_p0), %s2172_s1, 16  }
 0xb08   : > { %3478 = vsyncadd (!%p2984_p0), %s2172_s1, 4294967280  ;;  %s47_s3 = sadd.s32 1, %s4683_s17   ;;  %s4687_s0 = sld [smem:[#allocation27_spill]] }
 0xb09   : > { %p44_p4 = scmp.ge.s32.totalorder %s47_s3, 6   ;;  %s4688_s30 = sld [smem:[#allocation28_spill]] }
 0xb0a   : > { %s4689_s20 = sld [smem:[#allocation43_spill]]  ;;  %s4690_s21 = sld [smem:[#allocation30_spill]] }
 0xb0b   : > { %s4691_s1 = sld [smem:[#allocation31_spill]]  ;;  %s4692_s22 = sld [smem:[#allocation45_spill]] }
 0xb0c   : > { %s4693_s2 = sld [smem:[#allocation34_spill]]  ;;  %s4694_s23 = sld [smem:[#allocation35_spill]] }
 0xb0d   : > { %s4695_s24 = sld [smem:[#allocation41_spill]]  ;;  %s4696_s25 = sld [smem:[#allocation42_spill]] }
 0xb0e   :  { %46 = sbr.rel (!%p44_p4) target bundleno = 38 (0x26), region = 249 }
 0xb15   :  { %2176 = vsyncpa [#allocation4], 1 }
 0xb16   :  { %2178 = vsyncpa [#allocation4 + $0x1], 1 }
 0xb17   :  { %2179 = vsyncpa [#allocation7], 1 }
 0xb18   :  { %2180 = vsyncpa [#allocation10], 1 }
 0xb19   :  { %2182 = vsyncpa [#allocation10 + $0x1], 1 }
 0xb1a   :  { %2183 = vsyncpa [#allocation13], 1 }
 0xb1b   :  { %2185 = vsyncpa [#allocation13 + $0x1], 1 }
 0xb1c   :  { %2186 = vsyncpa [#allocation16], 1 }
 0xb1d   :  { %2187 = vsyncpa [#allocation5], 1 }
 0xb1e   :  { %2189 = vsyncpa [#allocation5 + $0x1], 1 }
 0xb1f   :  { %2190 = vsyncpa [#allocation19], 1 }
 0xb20   :  { %2192 = vsyncpa [#allocation19 + $0x1], 1 }

</bundles_post_ra>
